<compile_context>
chip_gen: v6e
topology: v6e:2x2x1
jax: 0.10.0
libtpu: 0.0.40
codegen_flags: <defaults>
</compile_context>

<pallas_src>
import jax
import jax.numpy as jnp
import numpy as np
from jax.experimental import pallas as pl
from jax.experimental.pallas import tpu as pltpu

BN_EPS = 1e-5


def basic_block_kernel(xp_ref, w1_ref, g1_ref, b1_ref, w2_ref, g2_ref, b2_ref,
                       p_ref, out_ref):
    """Fused BasicBlock, channel-packed layout.

    xp_ref : (N, H+2, (W+2)*C)  zero-padded input, W and C packed into lanes
    w*_ref : (9*W*C, W*C)       per-tap block-diagonal conv weights, tap-major
    g*/b*  : (1, W*C)           BatchNorm affine params tiled across W
    p_ref  : (W*C, W*C)         channel-fold matrix P[w*C+c, w'*C+c'] = (c==c')
    out_ref: (N*H, W*C)         lane-dense output
    """
    N, Hp, WpC = xp_ref.shape
    NH, WC = out_ref.shape
    H = Hp - 2
    C = (WpC - WC) // 2
    W = WC // C
    inv_count = 1.0 / float(N * H * W)        # BN stats span (N, H, W)

    xp = xp_ref[...]
    p_fold = p_ref[...]

    def gather_patches(padded):
        # padded: (N, Hp, WpC). Per tap (dy, dx) take the H x (W*C) window.
        # Slabs are lane-dense; concatenated at 128-aligned lane offsets into
        # one (NH, 9*W*C) im2col-style matrix -> a single matmul per conv.
        slabs = [padded[:, dy:dy + H, dx * C:dx * C + WC]
                 for dy in range(3) for dx in range(3)]
        return jnp.concatenate(slabs, axis=-1).reshape(NH, 9 * WC)

    def conv3x3(padded, w_ref):
        # One MXU dot with K = 9*W*C and full-width (W*C) output lanes instead
        # of nine K=C dots: far fewer MXU pushes, no VALU accumulate chain.
        # (bf16 operands would be possible on v6e/v7x; kept f32 for tolerance.)
        return jnp.dot(gather_patches(padded), w_ref[...],
                       preferred_element_type=jnp.float32)

    def batchnorm(h, g_ref, b_ref):
        # Train-mode BN (biased variance). Row reduction via ones-vector MXU
        # dot; per-channel fold + re-broadcast across W via the P matmul, so
        # there are no lane-sparse XLU reductions.
        ones_row = jnp.ones((1, NH), jnp.float32)
        colsum = jnp.dot(ones_row, h, preferred_element_type=jnp.float32)
        mean = jnp.dot(colsum, p_fold,
                       preferred_element_type=jnp.float32) * inv_count
        centered = h - mean
        colsq = jnp.dot(ones_row, centered * centered,
                        preferred_element_type=jnp.float32)
        var = jnp.dot(colsq, p_fold,
                      preferred_element_type=jnp.float32) * inv_count
        return centered * jax.lax.rsqrt(var + BN_EPS) * g_ref[...] + b_ref[...]

    # conv1 -> bn1 -> relu  (all lane-dense, f32)
    h = conv3x3(xp, w1_ref)
    h = batchnorm(h, g1_ref, b1_ref)
    h = jnp.maximum(h, 0.0)

    # Zero-pad the intermediate as a value (no whole-scratch zero + masked
    # partial store + reload): pad H with zero rows (sublane concat), pad W
    # with zero channel-groups (lane concat).
    h3 = h.reshape(N, H, WC)
    zrow = jnp.zeros((N, 1, WC), jnp.float32)
    hH = jnp.concatenate([zrow, h3, zrow], axis=1)             # (N, Hp, WC)
    zcol = jnp.zeros((N, Hp, C), jnp.float32)
    hp = jnp.concatenate([zcol, hH, zcol], axis=-1)            # (N, Hp, WpC)

    # conv2 -> bn2
    h2 = conv3x3(hp, w2_ref)
    h2 = batchnorm(h2, g2_ref, b2_ref)

    # identity residual (stride=1, inplanes == planes) + relu, lane-dense store
    residual = xp[:, 1:H + 1, C:C + WC].reshape(NH, WC)
    out_ref[...] = jnp.maximum(h2 + residual, 0.0)


def basic_block(x_nchw, w1, g1, b1, w2, g2, b2):
    """NCHW in/out like the PyTorch module. stride=1, downsample=None."""
    N, C, H, W = x_nchw.shape
    assert w1.shape[-1] == C, "identity shortcut requires inplanes == planes"
    WC = W * C

    # channel-packed, zero-padded input: (N, H+2, (W+2)*C)
    x = jnp.transpose(x_nchw, (0, 2, 3, 1))
    xp = jnp.pad(x, ((0, 0), (1, 1), (1, 1), (0, 0)))
    xp3 = xp.reshape(N, H + 2, (W + 2) * C)

    # Per-tap block-diagonal weights so each conv is one packed matmul.
    # Rows ordered (tap, w, cin); cols (w, cout).
    eye_w = jnp.eye(W, dtype=jnp.float32)

    def block_diag(w):
        taps = [jnp.kron(eye_w, w[dy, dx]) for dy in range(3) for dx in range(3)]
        return jnp.concatenate(taps, axis=0)                   # (9*W*C, W*C)

    wbd1 = block_diag(w1)
    wbd2 = block_diag(w2)

    # channel-fold matrix for BN stats / broadcast
    p_fold = jnp.kron(jnp.ones((W, W), jnp.float32),
                      jnp.eye(C, dtype=jnp.float32))           # (W*C, W*C)

    def tile_param(p):
        return jnp.tile(p, W).reshape(1, WC)

    # TODO(synk): BN stats are global over (N,H,W); using v7x's 2nd TensorCore
    # would need a parallel grid plus a two-pass BN (stats phase, normalize
    # phase). Kept single-invocation at these tiny shapes.
    out = pl.pallas_call(
        basic_block_kernel,
        out_shape=jax.ShapeDtypeStruct((N * H, WC), jnp.float32),
        in_specs=[pl.BlockSpec(memory_space=pltpu.MemorySpace.VMEM)] * 8,
        out_specs=pl.BlockSpec(memory_space=pltpu.MemorySpace.VMEM),
    )(xp3, wbd1, tile_param(g1), tile_param(b1),
      wbd2, tile_param(g2), tile_param(b2), p_fold)

    return jnp.transpose(out.reshape(N, H, W, C), (0, 3, 1, 2))


def ref_forward(x_nchw, w1, g1, b1, w2, g2, b2):
    """Pure-JAX reference matching torch BasicBlock.forward (train-mode BN)."""
    x = jnp.transpose(x_nchw, (0, 2, 3, 1))

    def conv(h, w):
        return jax.lax.conv_general_dilated(
            h, w, (1, 1), ((1, 1), (1, 1)),
            dimension_numbers=("NHWC", "HWIO", "NHWC"))

    def bn(h, g, b):
        m = jnp.mean(h, axis=(0, 1, 2))
        v = jnp.mean((h - m) ** 2, axis=(0, 1, 2))
        return (h - m) / jnp.sqrt(v + BN_EPS) * g + b

    h = jax.nn.relu(bn(conv(x, w1), g1, b1))
    h = bn(conv(h, w2), g2, b2)
    out = jax.nn.relu(h + x)
    return jnp.transpose(out, (0, 3, 1, 2))


if __name__ == "__main__":
    # BasicBlock(inplanes=8, planes=8, stride=1, downsample=None)
    N, C, H, W = 2, 8, 16, 16
    key = jax.random.PRNGKey(0)
    k1, k2, kx = jax.random.split(key, 3)

    fan_in = 9 * C
    w1 = jax.random.normal(k1, (3, 3, C, C), jnp.float32) * (2.0 / fan_in) ** 0.5
    w2 = jax.random.normal(k2, (3, 3, C, C), jnp.float32) * (2.0 / fan_in) ** 0.5
    # BatchNorm2d defaults: weight=1, bias=0
    g1 = jnp.ones((C,), jnp.float32)
    b1 = jnp.zeros((C,), jnp.float32)
    g2 = jnp.ones((C,), jnp.float32)
    b2 = jnp.zeros((C,), jnp.float32)

    x = jax.random.normal(kx, (N, C, H, W), jnp.float32)

    out = basic_block(x, w1, g1, b1, w2, g2, b2)
    out = jax.block_until_ready(out)

    ref = ref_forward(x, w1, g1, b1, w2, g2, b2)
    np.testing.assert_allclose(np.asarray(out), np.asarray(ref),
                               rtol=1e-3, atol=1e-3)
    print("KERNEL_OK")
</pallas_src>

<mosaic_0001>
module attributes {stable_mosaic.version = 11 : i64} {
  func.func @basic_block_kernel(%arg0: memref<2x18x144xf32, #tpu.memory_space<vmem>>, %arg1: memref<1152x128xf32, #tpu.memory_space<vmem>>, %arg2: memref<1x128xf32, #tpu.memory_space<vmem>>, %arg3: memref<1x128xf32, #tpu.memory_space<vmem>>, %arg4: memref<1152x128xf32, #tpu.memory_space<vmem>>, %arg5: memref<1x128xf32, #tpu.memory_space<vmem>>, %arg6: memref<1x128xf32, #tpu.memory_space<vmem>>, %arg7: memref<128x128xf32, #tpu.memory_space<vmem>>, %arg8: memref<32x128xf32, #tpu.memory_space<vmem>>) attributes {dimension_semantics = [], scalar_prefetch = 0 : i64, scratch_operands = 0 : i64, tpu.core_type = #tpu.core_type<tc>} {
    %c0 = arith.constant 0 : index
    %c0_0 = arith.constant 0 : index
    %c0_1 = arith.constant 0 : index
    %0 = vector.load %arg0[%c0, %c0_0, %c0_1] : memref<2x18x144xf32, #tpu.memory_space<vmem>>, vector<2x18x144xf32>
    %c0_2 = arith.constant 0 : index
    %c0_3 = arith.constant 0 : index
    %1 = vector.load %arg7[%c0_2, %c0_3] : memref<128x128xf32, #tpu.memory_space<vmem>>, vector<128x128xf32>
    %2 = vector.extract_strided_slice %0 {offsets = [0, 0, 0], sizes = [2, 16, 128], strides = [1, 1, 1]} : vector<2x18x144xf32> to vector<2x16x128xf32>
    %3 = vector.extract_strided_slice %0 {offsets = [0, 0, 8], sizes = [2, 16, 128], strides = [1, 1, 1]} : vector<2x18x144xf32> to vector<2x16x128xf32>
    %4 = vector.extract_strided_slice %0 {offsets = [0, 0, 16], sizes = [2, 16, 128], strides = [1, 1, 1]} : vector<2x18x144xf32> to vector<2x16x128xf32>
    %5 = vector.extract_strided_slice %0 {offsets = [0, 1, 0], sizes = [2, 16, 128], strides = [1, 1, 1]} : vector<2x18x144xf32> to vector<2x16x128xf32>
    %6 = vector.extract_strided_slice %0 {offsets = [0, 1, 8], sizes = [2, 16, 128], strides = [1, 1, 1]} : vector<2x18x144xf32> to vector<2x16x128xf32>
    %7 = vector.extract_strided_slice %0 {offsets = [0, 1, 16], sizes = [2, 16, 128], strides = [1, 1, 1]} : vector<2x18x144xf32> to vector<2x16x128xf32>
    %8 = vector.extract_strided_slice %0 {offsets = [0, 2, 0], sizes = [2, 16, 128], strides = [1, 1, 1]} : vector<2x18x144xf32> to vector<2x16x128xf32>
    %9 = vector.extract_strided_slice %0 {offsets = [0, 2, 8], sizes = [2, 16, 128], strides = [1, 1, 1]} : vector<2x18x144xf32> to vector<2x16x128xf32>
    %10 = vector.extract_strided_slice %0 {offsets = [0, 2, 16], sizes = [2, 16, 128], strides = [1, 1, 1]} : vector<2x18x144xf32> to vector<2x16x128xf32>
    %11 = tpu.concatenate %2, %3, %4, %5, %6, %7, %8, %9, %10 in 2 : vector<2x16x128xf32>, vector<2x16x128xf32>, vector<2x16x128xf32>, vector<2x16x128xf32>, vector<2x16x128xf32>, vector<2x16x128xf32>, vector<2x16x128xf32>, vector<2x16x128xf32>, vector<2x16x128xf32> -> vector<2x16x1152xf32>
    %12 = vector.shape_cast %11 : vector<2x16x1152xf32> to vector<32x1152xf32>
    %c0_4 = arith.constant 0 : index
    %c0_5 = arith.constant 0 : index
    %13 = vector.load %arg1[%c0_4, %c0_5] : memref<1152x128xf32, #tpu.memory_space<vmem>>, vector<1152x128xf32>
    %cst = arith.constant dense<0.000000e+00> : vector<32x128xf32>
    %14 = tpu.matmul %12, %13, %cst {dimension_numbers = #tpu.dot_dimension_numbers<[1], [0], [0], [1], [0, 0, 1, 1], [], []>} : vector<32x1152xf32>, vector<1152x128xf32>, vector<32x128xf32> -> vector<32x128xf32>
    %cst_6 = arith.constant 1.000000e+00 : f32
    %15 = vector.broadcast %cst_6 : f32 to vector<1x32xf32>
    %cst_7 = arith.constant dense<0.000000e+00> : vector<1x128xf32>
    %16 = tpu.matmul %15, %14, %cst_7 {dimension_numbers = #tpu.dot_dimension_numbers<[1], [0], [0], [1], [0, 0, 1, 1], [], []>} : vector<1x32xf32>, vector<32x128xf32>, vector<1x128xf32> -> vector<1x128xf32>
    %cst_8 = arith.constant dense<0.000000e+00> : vector<1x128xf32>
    %17 = tpu.matmul %16, %1, %cst_8 {dimension_numbers = #tpu.dot_dimension_numbers<[1], [0], [0], [1], [0, 0, 1, 1], [], []>} : vector<1x128xf32>, vector<128x128xf32>, vector<1x128xf32> -> vector<1x128xf32>
    %cst_9 = arith.constant 0.001953125 : f32
    %18 = vector.broadcast %cst_9 : f32 to vector<1x128xf32>
    %19 = arith.mulf %17, %18 : vector<1x128xf32>
    %20 = vector.broadcast %19 : vector<1x128xf32> to vector<32x128xf32>
    %21 = arith.subf %14, %20 : vector<32x128xf32>
    %22 = arith.mulf %21, %21 : vector<32x128xf32>
    %cst_10 = arith.constant dense<0.000000e+00> : vector<1x128xf32>
    %23 = tpu.matmul %15, %22, %cst_10 {dimension_numbers = #tpu.dot_dimension_numbers<[1], [0], [0], [1], [0, 0, 1, 1], [], []>} : vector<1x32xf32>, vector<32x128xf32>, vector<1x128xf32> -> vector<1x128xf32>
    %cst_11 = arith.constant dense<0.000000e+00> : vector<1x128xf32>
    %24 = tpu.matmul %23, %1, %cst_11 {dimension_numbers = #tpu.dot_dimension_numbers<[1], [0], [0], [1], [0, 0, 1, 1], [], []>} : vector<1x128xf32>, vector<128x128xf32>, vector<1x128xf32> -> vector<1x128xf32>
    %cst_12 = arith.constant 0.001953125 : f32
    %25 = vector.broadcast %cst_12 : f32 to vector<1x128xf32>
    %26 = arith.mulf %24, %25 : vector<1x128xf32>
    %cst_13 = arith.constant 9.99999974E-6 : f32
    %27 = vector.broadcast %cst_13 : f32 to vector<1x128xf32>
    %28 = arith.addf %26, %27 : vector<1x128xf32>
    %29 = math.rsqrt %28 : vector<1x128xf32>
    %30 = vector.broadcast %29 : vector<1x128xf32> to vector<32x128xf32>
    %31 = arith.mulf %21, %30 : vector<32x128xf32>
    %c0_14 = arith.constant 0 : index
    %c0_15 = arith.constant 0 : index
    %32 = vector.load %arg2[%c0_14, %c0_15] : memref<1x128xf32, #tpu.memory_space<vmem>>, vector<1x128xf32>
    %33 = vector.broadcast %32 : vector<1x128xf32> to vector<32x128xf32>
    %34 = arith.mulf %31, %33 : vector<32x128xf32>
    %c0_16 = arith.constant 0 : index
    %c0_17 = arith.constant 0 : index
    %35 = vector.load %arg3[%c0_16, %c0_17] : memref<1x128xf32, #tpu.memory_space<vmem>>, vector<1x128xf32>
    %36 = vector.broadcast %35 : vector<1x128xf32> to vector<32x128xf32>
    %37 = arith.addf %34, %36 : vector<32x128xf32>
    %cst_18 = arith.constant 0.000000e+00 : f32
    %38 = vector.broadcast %cst_18 : f32 to vector<32x128xf32>
    %39 = arith.maximumf %37, %38 : vector<32x128xf32>
    %40 = vector.shape_cast %39 : vector<32x128xf32> to vector<2x16x128xf32>
    %cst_19 = arith.constant 0.000000e+00 : f32
    %41 = vector.broadcast %cst_19 : f32 to vector<2x1x128xf32>
    %42 = tpu.concatenate %41, %40, %41 in 1 : vector<2x1x128xf32>, vector<2x16x128xf32>, vector<2x1x128xf32> -> vector<2x18x128xf32>
    %cst_20 = arith.constant 0.000000e+00 : f32
    %43 = vector.broadcast %cst_20 : f32 to vector<2x18x8xf32>
    %44 = tpu.concatenate %43, %42, %43 in 2 : vector<2x18x8xf32>, vector<2x18x128xf32>, vector<2x18x8xf32> -> vector<2x18x144xf32>
    %45 = vector.extract_strided_slice %44 {offsets = [0, 0, 0], sizes = [2, 16, 128], strides = [1, 1, 1]} : vector<2x18x144xf32> to vector<2x16x128xf32>
    %46 = vector.extract_strided_slice %44 {offsets = [0, 0, 8], sizes = [2, 16, 128], strides = [1, 1, 1]} : vector<2x18x144xf32> to vector<2x16x128xf32>
    %47 = vector.extract_strided_slice %44 {offsets = [0, 0, 16], sizes = [2, 16, 128], strides = [1, 1, 1]} : vector<2x18x144xf32> to vector<2x16x128xf32>
    %48 = vector.extract_strided_slice %44 {offsets = [0, 1, 0], sizes = [2, 16, 128], strides = [1, 1, 1]} : vector<2x18x144xf32> to vector<2x16x128xf32>
    %49 = vector.extract_strided_slice %44 {offsets = [0, 1, 8], sizes = [2, 16, 128], strides = [1, 1, 1]} : vector<2x18x144xf32> to vector<2x16x128xf32>
    %50 = vector.extract_strided_slice %44 {offsets = [0, 1, 16], sizes = [2, 16, 128], strides = [1, 1, 1]} : vector<2x18x144xf32> to vector<2x16x128xf32>
    %51 = vector.extract_strided_slice %44 {offsets = [0, 2, 0], sizes = [2, 16, 128], strides = [1, 1, 1]} : vector<2x18x144xf32> to vector<2x16x128xf32>
    %52 = vector.extract_strided_slice %44 {offsets = [0, 2, 8], sizes = [2, 16, 128], strides = [1, 1, 1]} : vector<2x18x144xf32> to vector<2x16x128xf32>
    %53 = vector.extract_strided_slice %44 {offsets = [0, 2, 16], sizes = [2, 16, 128], strides = [1, 1, 1]} : vector<2x18x144xf32> to vector<2x16x128xf32>
    %54 = tpu.concatenate %45, %46, %47, %48, %49, %50, %51, %52, %53 in 2 : vector<2x16x128xf32>, vector<2x16x128xf32>, vector<2x16x128xf32>, vector<2x16x128xf32>, vector<2x16x128xf32>, vector<2x16x128xf32>, vector<2x16x128xf32>, vector<2x16x128xf32>, vector<2x16x128xf32> -> vector<2x16x1152xf32>
    %55 = vector.shape_cast %54 : vector<2x16x1152xf32> to vector<32x1152xf32>
    %c0_21 = arith.constant 0 : index
    %c0_22 = arith.constant 0 : index
    %56 = vector.load %arg4[%c0_21, %c0_22] : memref<1152x128xf32, #tpu.memory_space<vmem>>, vector<1152x128xf32>
    %cst_23 = arith.constant dense<0.000000e+00> : vector<32x128xf32>
    %57 = tpu.matmul %55, %56, %cst_23 {dimension_numbers = #tpu.dot_dimension_numbers<[1], [0], [0], [1], [0, 0, 1, 1], [], []>} : vector<32x1152xf32>, vector<1152x128xf32>, vector<32x128xf32> -> vector<32x128xf32>
    %cst_24 = arith.constant 1.000000e+00 : f32
    %58 = vector.broadcast %cst_24 : f32 to vector<1x32xf32>
    %cst_25 = arith.constant dense<0.000000e+00> : vector<1x128xf32>
    %59 = tpu.matmul %58, %57, %cst_25 {dimension_numbers = #tpu.dot_dimension_numbers<[1], [0], [0], [1], [0, 0, 1, 1], [], []>} : vector<1x32xf32>, vector<32x128xf32>, vector<1x128xf32> -> vector<1x128xf32>
    %cst_26 = arith.constant dense<0.000000e+00> : vector<1x128xf32>
    %60 = tpu.matmul %59, %1, %cst_26 {dimension_numbers = #tpu.dot_dimension_numbers<[1], [0], [0], [1], [0, 0, 1, 1], [], []>} : vector<1x128xf32>, vector<128x128xf32>, vector<1x128xf32> -> vector<1x128xf32>
    %cst_27 = arith.constant 0.001953125 : f32
    %61 = vector.broadcast %cst_27 : f32 to vector<1x128xf32>
    %62 = arith.mulf %60, %61 : vector<1x128xf32>
    %63 = vector.broadcast %62 : vector<1x128xf32> to vector<32x128xf32>
    %64 = arith.subf %57, %63 : vector<32x128xf32>
    %65 = arith.mulf %64, %64 : vector<32x128xf32>
    %cst_28 = arith.constant dense<0.000000e+00> : vector<1x128xf32>
    %66 = tpu.matmul %58, %65, %cst_28 {dimension_numbers = #tpu.dot_dimension_numbers<[1], [0], [0], [1], [0, 0, 1, 1], [], []>} : vector<1x32xf32>, vector<32x128xf32>, vector<1x128xf32> -> vector<1x128xf32>
    %cst_29 = arith.constant dense<0.000000e+00> : vector<1x128xf32>
    %67 = tpu.matmul %66, %1, %cst_29 {dimension_numbers = #tpu.dot_dimension_numbers<[1], [0], [0], [1], [0, 0, 1, 1], [], []>} : vector<1x128xf32>, vector<128x128xf32>, vector<1x128xf32> -> vector<1x128xf32>
    %cst_30 = arith.constant 0.001953125 : f32
    %68 = vector.broadcast %cst_30 : f32 to vector<1x128xf32>
    %69 = arith.mulf %67, %68 : vector<1x128xf32>
    %cst_31 = arith.constant 9.99999974E-6 : f32
    %70 = vector.broadcast %cst_31 : f32 to vector<1x128xf32>
    %71 = arith.addf %69, %70 : vector<1x128xf32>
    %72 = math.rsqrt %71 : vector<1x128xf32>
    %73 = vector.broadcast %72 : vector<1x128xf32> to vector<32x128xf32>
    %74 = arith.mulf %64, %73 : vector<32x128xf32>
    %c0_32 = arith.constant 0 : index
    %c0_33 = arith.constant 0 : index
    %75 = vector.load %arg5[%c0_32, %c0_33] : memref<1x128xf32, #tpu.memory_space<vmem>>, vector<1x128xf32>
    %76 = vector.broadcast %75 : vector<1x128xf32> to vector<32x128xf32>
    %77 = arith.mulf %74, %76 : vector<32x128xf32>
    %c0_34 = arith.constant 0 : index
    %c0_35 = arith.constant 0 : index
    %78 = vector.load %arg6[%c0_34, %c0_35] : memref<1x128xf32, #tpu.memory_space<vmem>>, vector<1x128xf32>
    %79 = vector.broadcast %78 : vector<1x128xf32> to vector<32x128xf32>
    %80 = arith.addf %77, %79 : vector<32x128xf32>
    %81 = vector.extract_strided_slice %0 {offsets = [0, 1, 8], sizes = [2, 16, 128], strides = [1, 1, 1]} : vector<2x18x144xf32> to vector<2x16x128xf32>
    %82 = vector.shape_cast %81 : vector<2x16x128xf32> to vector<32x128xf32>
    %83 = arith.addf %80, %82 : vector<32x128xf32>
    %cst_36 = arith.constant 0.000000e+00 : f32
    %84 = vector.broadcast %cst_36 : f32 to vector<32x128xf32>
    %85 = arith.maximumf %83, %84 : vector<32x128xf32>
    %c0_37 = arith.constant 0 : index
    %c0_38 = arith.constant 0 : index
    %86 = vector.load %arg8[%c0_37, %c0_38] : memref<32x128xf32, #tpu.memory_space<vmem>>, vector<32x128xf32>
    tpu.vector_store %arg8[%c0_37, %c0_38], %85 {strides = array<i32>} : memref<32x128xf32, #tpu.memory_space<vmem>>, vector<32x128xf32>,
    return
  }
}

</mosaic_0001>

<bundles_post_ra>
// kernel: tpu_custom_call.1
= control target key start
LH: loop header
LB: loop body
LE: loop exit
PB: predicated region body
PF: predicated region fallthrough
CT: control target
= control target key end

     0   :  { %13 = vsyncpa [#allocation3], 0  ;;  %s4376_s0 = inlined_call_operand.vmem [shape: f32[2,18,144], index: 0, kind: input, shape index: {}]   ;;  %s4377_s1 = inlined_call_operand.hbm [shape: f32[1152,128], index: 1, kind: input, shape index: {}]   ;;  %s4378_s2 = inlined_call_operand.vmem [shape: f32[1,128], index: 2, kind: input, shape index: {}]   ;;  %s4379_s3 = inlined_call_operand.vmem [shape: f32[1,128], index: 3, kind: input, shape index: {}]   ;;  %s4380_s4 = inlined_call_operand.hbm [shape: f32[1152,128], index: 4, kind: input, shape index: {}]   ;;  %s4381_s5 = inlined_call_operand.vmem [shape: f32[1,128], index: 5, kind: input, shape index: {}]   ;;  %s4382_s6 = inlined_call_operand.vmem [shape: f32[1,128], index: 6, kind: input, shape index: {}]   ;;  %s4383_s7 = inlined_call_operand.vmem [shape: f32[128,128], index: 7, kind: input, shape index: {}]   ;;  %s4384_s8 = inlined_call_operand.hbm [shape: f32[32,128], index: 8, kind: output, shape index: {}]  }
   0x1   :  { %14 = vsyncpa [#allocation6], 0 }
   0x2   :  { %15 = vsyncpa [#allocation4], 0  ;;  %s3457_s27 = smov [#allocation2]  }
   0x3   :  { %s23_s28 = sshll.u32 %s3457_s27, 4  ;;  %s24_s28 = int_to_ptr.vmem [resolvable:$true] %s23_s28 }
   0x4   :  { %s3399_s29 = scalar_lea.vmem %s24_s28, 18432  ;;  %p3404_p1 = scmp.lt.s32.totalorder %s24_s28, %s24_s28 }
   0x5   :  { %p3400_p0 = scmp.ne.s32.totalorder %s24_s28, %s3399_s29  ;;  %p3405_p2 = scmp.lt.s32.totalorder %s3399_s29, %s3399_s29 }
   0x7   :  { %p3406_p3 = por %p3405_p2, %p3404_p1 }
   0x9   :  { %p3407_p4 = pnand %p3406_p3, %p3400_p0 }
   0xb   :  { %3410 = shalt.err (!%p3407_p4)
}
   0xc   :  { %s3458_s30 = smov 128   ;;  %s3459_s9 = smov 8  }
   0xd   :  { %29 = dma.hbm_to_vmem [thread:$0]  %s4377_s1, 18432, %s24_s28, [#allocation3], %s3458_s30, %s3458_s30, %s3459_s9  }
   0xe   :  { %s3460_s12 = smov [#allocation5]  }
   0xf   :  { %s39_s13 = sshll.u32 %s3460_s12, 4  ;;  %s40_s13 = int_to_ptr.vmem [resolvable:$true] %s39_s13 }
  0x10   :  { %s3419_s14 = scalar_lea.vmem %s40_s13, 18432  ;;  %p3424_p6 = scmp.lt.s32.totalorder %s40_s13, %s40_s13 }
  0x11   :  { %p3420_p5 = scmp.ne.s32.totalorder %s40_s13, %s3419_s14  ;;  %p3425_p7 = scmp.lt.s32.totalorder %s3419_s14, %s3419_s14 }
  0x13   :  { %p3426_p8 = por %p3425_p7, %p3424_p6 }
  0x15   :  { %p3427_p9 = pnand %p3426_p8, %p3420_p5 }
  0x17   :  { %3430 = shalt.err (!%p3427_p9)
}
  0x18   :  { %45 = dma.hbm_to_vmem [thread:$0]  %s4380_s4, 18432, %s40_s13, [#allocation6], %s3458_s30, %s3458_s30, %s3459_s9  }
  0x19   :  { %3451 = dma.done.wait [#allocation3], 18432  }
  0x1a   :  { %3452 = vsyncadd [#allocation3], 4294948864 }
  0x1b   :  { %3453 = dma.done.wait [#allocation6], 18432  }
  0x1c   :  { %3454 = vsyncadd [#allocation6], 4294948864  ;;  %v3527_v0 = vld [vmem:[%s4376_s0] sm:$0xff]  ;;  %v3532_v1 = vld [vmem:[%s4376_s0 + $0x8] sm:$0xff]  ;;  %vm146_vm0 = vcmask 1046528   ;;  %s3461_s27 = smov 120  }
  0x1d   :  { %v3537_v2 = vld [vmem:[%s4376_s0 + $0x10] sm:$0xff]  ;;  %v3146_v3 = vpack.i.bf16 %v3532_v1, %v3527_v0  ;;  %v3544_v4 = vld [vmem:[%s4376_s0 + $0x18] sm:$0xff]  ;;  %v147_v7 = vrot.slane %v3527_v0, 1  ;;  %v163_v10 = vrot.slane %v3532_v1, 1  ;;  %v3568_v12 = vld [vmem:[%s4376_s0 + $0x40] sm:$0xff]  ;;  %s3462_s12 = smov 112  }
  0x1e   :  { %v3549_v5 = vld [vmem:[%s4376_s0 + $0x30] sm:$0xff]  ;;  %v3554_v6 = vld [vmem:[%s4376_s0 + $0x38] sm:$0xff]  ;;  %v148_v8 = vrot.slane %v3537_v2, 1  ;;  %v3560_v9 = vpack.i.bf16 %v3544_v4, %v3537_v2  ;;  %v164_v11 = vrot.slane %v3544_v4, 1  ;;  %v3573_v13 = vld [vmem:[%s4376_s0 + $0x48] sm:$0xff]  ;;  %v222_v33 = vrot.slane %v3527_v0, 2 }
  0x1f   :  { %3147 = vrot.lane.b32.xlu0 %v3146_v3, %s3461_s27  ;;  %v3582_v15 = vpack.i.bf16 %v3554_v6, %v3549_v5  ;;  %v325_v16 = vld [vmem:[#allocation2 + $0xf8] sm:$0xff]  ;;  %v324_v18 = vld [vmem:[#allocation2 + $0xf0] sm:$0xff]  ;;  %v3590_v23 = vpack.i.bf16 %v3573_v13, %v3568_v12  ;;  %v323_v24 = vld [vmem:[#allocation2 + $0xe8] sm:$0xff]  ;;  %v223_v34 = vrot.slane %v3537_v2, 2  ;;  %v236_v35 = vrot.slane %v3532_v1, 2 }
  0x20   :  { %v149_v14 = vsel %vm146_vm0, %v147_v7, %v148_v8  ;;  %3157 = vrot.lane.b32.xlu1 %v3560_v9, %s3461_s27  ;;  %v309_v17 = vld [vmem:[#allocation2 + $0x78] sm:$0xff]  ;;  %v165_v19 = vsel %vm146_vm0, %v163_v10, %v164_v11  ;;  %2396 = vmatprep.subr.mxu0 %v325_v16  ;;  %v308_v21 = vld [vmem:[#allocation2 + $0x70] sm:$0xff]  ;;  %v307_v27 = vld [vmem:[#allocation2 + $0x68] sm:$0xff]  ;;  %v237_v36 = vrot.slane %v3544_v4, 2  ;;  %vm221_vm1 = vcmask 1045504  }
  0x21   :  { %587 = vmatprep.mubr.f32.mxu1 %v149_v14  ;;  %v357_v20 = vld [vmem:[#allocation2 + $0x1f8] sm:$0xff]  ;;  %2397 = vmatpush3.msra.mxu0 %v309_v17  ;;  %v356_v25 = vld [vmem:[#allocation2 + $0x1f0] sm:$0xff]  ;;  %v3171_v26 = vpack.i.bf16 %v165_v19, %v149_v14  ;;  %v322_v28 = vld [vmem:[#allocation2 + $0xe0] sm:$0xff]  ;;  %v3616_v45 = vsel %vm221_vm1, %v222_v33, %v223_v34  ;;  %v152_v1 = vrot.slane %v3549_v5, 1  ;;  %v168_v4 = vrot.slane %v3554_v6, 1 }
  0x22   :  { %2440 = vmatprep.subr.mxu1 %v357_v20  ;;  %v341_v22 = vld [vmem:[#allocation2 + $0x178] sm:$0xff]  ;;  %2398 = vmatprep.subr.mxu0 %v324_v18  ;;  %v340_v29 = vld [vmem:[#allocation2 + $0x170] sm:$0xff]  ;;  %v306_v30 = vld [vmem:[#allocation2 + $0x60] sm:$0xff]  ;;  %v238_v46 = vsel %vm221_vm1, %v236_v35, %v237_v36  ;;  %v169_v7 = vrot.slane %v3573_v13, 1  ;;  %vm110_vm2 = vcmask 982016   ;;  %vm135_vm3 = vcmask 916480  }
  0x23   :  { %3152 = vrot.lane.b32.xlu0 %v3146_v3, %s3462_s12  ;;  %2399 = vmatpush3.msra.mxu0 %v308_v21  ;;  %v3600_v31 = vld [vmem:[%s4376_s0 + $0x20] sm:$0x3]  ;;  %v3605_v32 = vld [vmem:[%s4376_s0 + $0x28] sm:$0x3]  ;;  %v321_v38 = vld [vmem:[#allocation2 + $0xd8] sm:$0xff]  ;;  %v3624_v52 = vpack.i.bf16 %v238_v46, %v3616_v45  ;;  %v153_v3 = vrot.slane %v3568_v12, 1 }
  0x24   :  { %3162 = vrot.lane.b32.xlu1 %v3582_v15, %s3461_s27  ;;  %2441 = vmatpush3.msra.mxu1 %v341_v22  ;;  %v355_v37 = vld [vmem:[#allocation2 + $0x1e8] sm:$0xff]  ;;  %v305_v40 = vld [vmem:[#allocation2 + $0x58] sm:$0xff]  ;;  %v354_v41 = vld [vmem:[#allocation2 + $0x1e0] sm:$0xff]  ;;  %v150_v42 = vrot.slane %v3600_v31, 1  ;;  %v166_v43 = vrot.slane %v3605_v32, 1  ;;  %v225_v56 = vrot.slane %v3600_v31, 2  ;;  %v170_v20 = vsel %vm146_vm0, %v168_v4, %v169_v7 }
  0x25   :  { %2400 = vmatprep.subr.mxu0 %v323_v24  ;;  %2442 = vmatprep.subr.mxu1 %v356_v25  ;;  %v339_v39 = vld [vmem:[#allocation2 + $0x168] sm:$0xff]  ;;  %v320_v44 = vld [vmem:[#allocation2 + $0xd0] sm:$0xff]  ;;  %v338_v47 = vld [vmem:[#allocation2 + $0x160] sm:$0xff]  ;;  %v239_v57 = vrot.slane %v3605_v32, 2  ;;  %v227_v24 = vrot.slane %v3549_v5, 2  ;;  %v228_v25 = vrot.slane %v3568_v12, 2 }
  0x26   :  { %2401 = vmatpush3.msra.mxu0 %v307_v27  ;;  %2443 = vmatpush3.msra.mxu1 %v340_v29  ;;  %v304_v48 = vld [vmem:[#allocation2 + $0x50] sm:$0xff]  ;;  %v353_v49 = vld [vmem:[#allocation2 + $0x1d8] sm:$0xff]  ;;  %v319_v50 = vld [vmem:[#allocation2 + $0xc8] sm:$0xff]  ;;  %v3629_v53 = vsel %vm146_vm0, %v148_v8, %v150_v42  ;;  %v167_v54 = vsel %vm146_vm0, %v164_v11, %v166_v43  ;;  %v242_v27 = vrot.slane %v3573_v13, 2  ;;  %vm3464_vm4 = vmmov 0  }
  0x27   :  { %3167 = vrot.lane.b32.xlu0 %v3590_v23, %s3461_s27  ;;  %2402 = vmatprep.subr.mxu0 %v322_v28  ;;  %v337_v51 = vld [vmem:[#allocation2 + $0x158] sm:$0xff]  ;;  %v303_v55 = vld [vmem:[#allocation2 + $0x48] sm:$0xff]  ;;  %v352_v58 = vld [vmem:[#allocation2 + $0x1d0] sm:$0xff]  ;;  %v3196_v61 = vpack.i.bf16 %v167_v54, %v3629_v53  ;;  %v240_v10 = vsel %vm221_vm1, %v237_v36, %v239_v57  ;;  %v3682_v35 = vsel %vm221_vm1, %v227_v24, %v228_v25  ;;  %vm863_vm5 = vcmask 261120  }
  0x28   :  { %3172 = vrot.lane.b32.xlu1 %v3171_v26, %s3462_s12  ;;  %2403 = vmatpush3.msra.mxu0 %v306_v30  ;;  %v318_v59 = vld [vmem:[#allocation2 + $0xc0] sm:$0xff]  ;;  %v336_v60 = vld [vmem:[#allocation2 + $0x150] sm:$0xff]  ;;  %v351_v63 = vld [vmem:[#allocation2 + $0x1c8] sm:$0xff]  ;;  %v241_v26 = vrot.slane %v3554_v6, 2  ;;  %vm1201_vm6 = vcmask 1040384   ;;  %vm1238_vm7 = vcmask 64512  }
  0x29   :  { %2444 = vmatprep.subr.mxu1 %v355_v37  ;;  %2404 = vmatprep.subr.mxu0 %v321_v38  ;;  %v302_v62 = vld [vmem:[#allocation2 + $0x40] sm:$0xff]  ;;  %v317_v8 = vld [vmem:[#allocation2 + $0xb8] sm:$0xff]  ;;  %v335_v11 = vld [vmem:[#allocation2 + $0x148] sm:$0xff] }
  0x2a   :  { %2445 = vmatpush3.msra.mxu1 %v339_v39  ;;  %2405 = vmatpush3.msra.mxu0 %v305_v40  ;;  %v316_v16 = vld [vmem:[#allocation2 + $0xb0] sm:$0xff]  ;;  %v334_v17 = vld [vmem:[#allocation2 + $0x140] sm:$0xff]  ;;  %v3669_v22 = vld [vmem:[%s4376_s0 + $0x58] sm:$0x3]  ;;  %v243_v36 = vsel %vm221_vm1, %v241_v26, %v242_v27 }
  0x2b   :  { %173 = vrot.lane.b32.xlu0 %v149_v14, %s3461_s27  ;;  %2446 = vmatprep.subr.mxu1 %v354_v41  ;;  %v301_v14 = vld [vmem:[#allocation2 + $0x38] sm:$0xff]  ;;  %v3664_v21 = vld [vmem:[%s4376_s0 + $0x50] sm:$0x3]  ;;  %v315_v29 = vld [vmem:[#allocation2 + $0xa8] sm:$0xff]  ;;  %v171_v13 = vrot.slane %v3669_v22, 1  ;;  %v3211_v42 = vpack.i.bf16 %v243_v36, %v3682_v35  ;;  %s3466_s0 = smov [#allocation7]  }
  0x2c   :  { %175 = vrot.lane.b32.xlu1 %v165_v19, %s3461_s27  ;;  %2406 = vmatprep.subr.mxu0 %v320_v44  ;;  %v3658_v19 = vsel %vm146_vm0, %v152_v1, %v153_v3  ;;  %v349_v28 = vld [vmem:[#allocation2 + $0x1b8] sm:$0xff]  ;;  %v299_v32 = vld [vmem:[#allocation2 + $0x28] sm:$0xff]  ;;  %v348_v33 = vld [vmem:[#allocation2 + $0x1b0] sm:$0xff]  ;;  %v155_v6 = vrot.slane %v3664_v21, 1  ;;  %s2367_s20 = sshll.u32 %s3466_s0, 4  ;;  %s2368_s20 = int_to_ptr.vmem [resolvable:$true] %s2367_s20 }
  0x2d   :  { %2447 = vmatpush3.msra.mxu1 %v338_v47  ;;  %2407 = vmatpush3.msra.mxu0 %v304_v48  ;;  %v333_v30 = vld [vmem:[#allocation2 + $0x138] sm:$0xff]  ;;  %v3206_v31 = vpack.i.bf16 %v170_v20, %v3658_v19  ;;  %v332_v37 = vld [vmem:[#allocation2 + $0x130] sm:$0xff]  ;;  %v298_v38 = vld [vmem:[#allocation2 + $0x20] sm:$0xff]  ;;  %v172_v44 = vsel %vm146_vm0, %v169_v7, %v171_v13  ;;  %v230_v47 = vrot.slane %v3664_v21, 2  ;;  %v244_v48 = vrot.slane %v3669_v22, 2  ;;  %p3436_p11 = scmp.lt.s32.totalorder %s2368_s20, %s2368_s20 }
  0x2e   :  { %2448 = vmatprep.subr.mxu1 %v353_v49  ;;  %2408 = vmatprep.subr.mxu0 %v319_v50  ;;  %v347_v39 = vld [vmem:[#allocation2 + $0x1a8] sm:$0xff]  ;;  %v313_v40 = vld [vmem:[#allocation2 + $0x98] sm:$0xff]  ;;  %v3692_v43 = vsel %vm146_vm0, %v153_v3, %v155_v6  ;;  %v346_v49 = vld [vmem:[#allocation2 + $0x1a0] sm:$0xff] }
  0x2f   :  { %3177 = vrot.lane.b32.xlu0 %v3560_v9, %s3462_s12  ;;  %2449 = vmatpush3.msra.mxu1 %v337_v51  ;;  %v3646_v9 = vsel %vm221_vm1, %v223_v34, %v225_v56  ;;  %v314_v34 = vld [vmem:[#allocation2 + $0xa0] sm:$0xff]  ;;  %v331_v41 = vld [vmem:[#allocation2 + $0x128] sm:$0xff]  ;;  %v297_v46 = vld [vmem:[#allocation2 + $0x18] sm:$0xff] }
  0x30   :  { %3182 = vrot.lane.b32.xlu1 %v3582_v15, %s3462_s12  ;;  %2409 = vmatpush3.msra.mxu0 %v303_v55  ;;  %v350_v15 = vld [vmem:[#allocation2 + $0x1c0] sm:$0xff]  ;;  %v3653_v18 = vpack.i.bf16 %v240_v10, %v3646_v9  ;;  %v312_v50 = vld [vmem:[#allocation2 + $0x90] sm:$0xff]  ;;  %v345_v56 = vld [vmem:[#allocation2 + $0x198] sm:$0xff] }
  0x31   :  { %2450 = vmatprep.subr.mxu1 %v352_v58  ;;  %2410 = vmatprep.subr.mxu0 %v318_v59  ;;  %v330_v51 = vld [vmem:[#allocation2 + $0x120] sm:$0xff]  ;;  %v296_v55 = vld [vmem:[#allocation2 + $0x10] sm:$0xff]  ;;  %v311_v57 = vld [vmem:[#allocation2 + $0x88] sm:$0xff]  ;;  %v3701_v58 = vsel %vm221_vm1, %v228_v25, %v230_v47  ;;  %v245_v59 = vsel %vm221_vm1, %v242_v27, %v244_v48 }
  0x32   :  { %2451 = vmatpush3.msra.mxu1 %v336_v60  ;;  %2411 = vmatpush3.msra.mxu0 %v302_v62  ;;  %v329_v60 = vld [vmem:[#allocation2 + $0x118] sm:$0xff]  ;;  %v344_v62 = vld [vmem:[#allocation2 + $0x190] sm:$0xff]  ;;  %v3221_v3 = vpack.i.bf16 %v245_v59, %v3701_v58  ;;  %v294_v4 = vld [vmem:[#allocation2] sm:$0xff] }
  0x33   :  { %3187 = vrot.lane.b32.xlu0 %v3590_v23, %s3462_s12  ;;  %2452 = vmatprep.subr.mxu1 %v351_v63  ;;  %v300_v23 = vld [vmem:[#allocation2 + $0x30] sm:$0xff]  ;;  %v310_v63 = vld [vmem:[#allocation2 + $0x80] sm:$0xff]  ;;  %v343_v7 = vld [vmem:[#allocation2 + $0x188] sm:$0xff] }
  0x34   :  { %3192 = vrot.lane.b32.xlu1 %v3624_v52, %s3461_s27  ;;  %2412 = vmatprep.subr.mxu0 %v317_v8  ;;  %v328_v1 = vld [vmem:[#allocation2 + $0x110] sm:$0xff]  ;;  %v327_v8 = vld [vmem:[#allocation2 + $0x108] sm:$0xff]  ;;  %v389_v10 = vld [vmem:[#allocation2 + $0x2f8] sm:$0xff] }
  0x35   :  { %2453 = vmatpush3.msra.mxu1 %v335_v11  ;;  %2413 = vmatpush3.msra.mxu0 %v301_v14  ;;  %v342_v11 = vld [vmem:[#allocation2 + $0x180] sm:$0xff]  ;;  %v373_v25 = vld [vmem:[#allocation2 + $0x278] sm:$0xff]  ;;  %v388_v26 = vld [vmem:[#allocation2 + $0x2f0] sm:$0xff] }
  0x36   :  { %2454 = vmatprep.subr.mxu1 %v350_v15  ;;  %2414 = vmatprep.subr.mxu0 %v316_v16  ;;  %v326_v14 = vld [vmem:[#allocation2 + $0x100] sm:$0xff]  ;;  %v421_v15 = vld [vmem:[#allocation2 + $0x3f8] sm:$0xff]  ;;  %v371_v6 = vld [vmem:[#allocation2 + $0x268] sm:$0xff] }
  0x37   :  { %3197 = vrot.lane.b32.xlu0 %v3196_v61, %s3462_s12  ;;  %2455 = vmatpush3.msra.mxu1 %v334_v17  ;;  %v295_v61 = vld [vmem:[#allocation2 + $0x8] sm:$0xff]  ;;  %v420_v13 = vld [vmem:[#allocation2 + $0x3f0] sm:$0xff]  ;;  %v386_v36 = vld [vmem:[#allocation2 + $0x2e0] sm:$0xff] }
  0x38   :  { %177 = vrot.lane.b32.xlu1 %v3629_v53, %s3461_s27  ;;  %2415 = vmatpush3.msra.mxu0 %v300_v23  ;;  %v402_v48 = vld [vmem:[#allocation2 + $0x360] sm:$0xff]  ;;  %vm4106_vm8 = vmneg %vm1238_vm7 }
  0x39   :  { %2456 = vmatprep.subr.mxu1 %v349_v28  ;;  %2416 = vmatprep.subr.mxu0 %v315_v29 }
  0x3a   :  { %2457 = vmatpush3.msra.mxu1 %v333_v30  ;;  %2417 = vmatpush3.msra.mxu0 %v299_v32  ;;  %v372_v30 = vld [vmem:[#allocation2 + $0x270] sm:$0xff]  ;;  %v405_v32 = vld [vmem:[#allocation2 + $0x378] sm:$0xff] }
  0x3b   :  { %179 = vrot.lane.b32.xlu0 %v167_v54, %s3461_s27  ;;  %2458 = vmatprep.subr.mxu1 %v348_v33  ;;  %v3216_v54 = vpack.i.bf16 %v172_v44, %v3692_v43 }
  0x3c   :  { %3202 = vrot.lane.b32.xlu1 %v3653_v18, %s3461_s27  ;;  %2418 = vmatprep.subr.mxu0 %v314_v34 }
  0x3d   :  { %2459 = vmatpush3.msra.mxu1 %v332_v37  ;;  %2419 = vmatpush3.msra.mxu0 %v298_v38  ;;  %v404_v37 = vld [vmem:[#allocation2 + $0x370] sm:$0xff]  ;;  %v370_v38 = vld [vmem:[#allocation2 + $0x260] sm:$0xff] }
  0x3e   :  { %2460 = vmatprep.subr.mxu1 %v347_v39  ;;  %2420 = vmatprep.subr.mxu0 %v313_v40  ;;  %v419_v39 = vld [vmem:[#allocation2 + $0x3e8] sm:$0xff]  ;;  %v385_v40 = vld [vmem:[#allocation2 + $0x2d8] sm:$0xff] }
  0x3f   :  { %3207 = vrot.lane.b32.xlu0 %v3206_v31, %s3462_s12  ;;  %2461 = vmatpush3.msra.mxu1 %v331_v41  ;;  %v387_v31 = vld [vmem:[#allocation2 + $0x2e8] sm:$0xff] }
  0x40   :  { %181 = vrot.lane.b32.xlu1 %v3658_v19, %s3461_s27  ;;  %2421 = vmatpush3.msra.mxu0 %v297_v46  ;;  %v403_v41 = vld [vmem:[#allocation2 + $0x368] sm:$0xff]  ;;  %v384_v46 = vld [vmem:[#allocation2 + $0x2d0] sm:$0xff] }
  0x41   :  { %2462 = vmatprep.subr.mxu1 %v346_v49  ;;  %2422 = vmatprep.subr.mxu0 %v312_v50  ;;  %v368_v50 = vld [vmem:[#allocation2 + $0x250] sm:$0xff] }
  0x42   :  { %2463 = vmatpush3.msra.mxu1 %v330_v51  ;;  %2423 = vmatpush3.msra.mxu0 %v296_v55  ;;  %v417_v51 = vld [vmem:[#allocation2 + $0x3d8] sm:$0xff] }
  0x43   :  { %183 = vrot.lane.b32.xlu0 %v170_v20, %s3461_s27  ;;  %2464 = vmatprep.subr.mxu1 %v345_v56  ;;  %v401_v55 = vld [vmem:[#allocation2 + $0x358] sm:$0xff]  ;;  %v367_v56 = vld [vmem:[#allocation2 + $0x248] sm:$0xff] }
  0x44   :  { %3212 = vrot.lane.b32.xlu1 %v3211_v42, %s3461_s27  ;;  %2424 = vmatprep.subr.mxu0 %v311_v57  ;;  %v416_v57 = vld [vmem:[#allocation2 + $0x3d0] sm:$0xff] }
  0x45   :  { %2465 = vmatpush3.msra.mxu1 %v329_v60  ;;  %2425 = vmatpush3.msra.mxu0 %v295_v61  ;;  %v382_v61 = vld [vmem:[#allocation2 + $0x2c0] sm:$0xff] }
  0x46   :  { %2466 = vmatprep.subr.mxu1 %v344_v62  ;;  %2426 = vmatprep.subr.mxu0 %v310_v63  ;;  %v400_v63 = vld [vmem:[#allocation2 + $0x350] sm:$0xff] }
  0x47   :  { %3217 = vrot.lane.b32.xlu0 %v3216_v54, %s3462_s12  ;;  %2467 = vmatpush3.msra.mxu1 %v328_v1  ;;  %v383_v54 = vld [vmem:[#allocation2 + $0x2c8] sm:$0xff] }
  0x48   :  { %185 = vrot.lane.b32.xlu1 %v3692_v43, %s3461_s27  ;;  %2427 = vmatpush3.msra.mxu0 %v294_v4  ;;  %v366_v4 = vld [vmem:[#allocation2 + $0x240] sm:$0xff] }
  0x49   :  { %2468 = vmatprep.subr.mxu1 %v343_v7  ;;  %2484 = vmatprep.subr.mxu0 %v389_v10  ;;  %v399_v7 = vld [vmem:[#allocation2 + $0x348] sm:$0xff] }
  0x4a   :  { %2469 = vmatpush3.msra.mxu1 %v327_v8 }
  0x4b   :  { %187 = vrot.lane.b32.xlu0 %v172_v44, %s3461_s27  ;;  %2470 = vmatprep.subr.mxu1 %v342_v11  ;;  %v418_v44 = vld [vmem:[#allocation2 + $0x3e0] sm:$0xff]  ;;  %v381_v11 = vld [vmem:[#allocation2 + $0x2b8] sm:$0xff] }
  0x4c   :  { %3222 = vrot.lane.b32.xlu1 %v3221_v3, %s3461_s27  ;;  %2471 = vmatpush3.msra.mxu1 %v326_v14  ;;  %v414_v14 = vld [vmem:[#allocation2 + $0x3c0] sm:$0xff] }
  0x4d   :  { %2528 = vmatprep.subr.mxu1 %v421_v15  ;;  %v365_v15 = vld [vmem:[#allocation2 + $0x238] sm:$0xff] }
  0x4f   :  { %3227 = vrot.lane.b32.xlu0 %v3624_v52, %s3462_s12 }
  0x50   :  { %3232 = vrot.lane.b32.xlu1 %v3653_v18, %s3462_s12 }
  0x53   :  { %3237 = vrot.lane.b32.xlu0 %v3211_v42, %s3462_s12  ;;  %v369_v42 = vld [vmem:[#allocation2 + $0x258] sm:$0xff] }
  0x54   :  { %3242 = vrot.lane.b32.xlu1 %v3221_v3, %s3462_s12  ;;  %v415_v3 = vld [vmem:[#allocation2 + $0x3c8] sm:$0xff] }
  0x91   :  { %v3148_v16 = vpop.permute.xlu0 %3147 }
  0x92   :  { %v3150_v17 = vunpack.i.h.bf16 %v3148_v16  ;;  %v3149_v20 = vunpack.i.l.bf16 %v3148_v16  ;;  %v3158_v21 = vpop.permute.xlu1 %3157 }
  0x93   :  { %v3160_v22 = vunpack.i.h.bf16 %v3158_v21  ;;  %v3159_v23 = vunpack.i.l.bf16 %v3158_v21 }
  0x94   :  { %v111_v24 = vsel %vm110_vm2, %v3149_v20, %v3150_v17  ;;  %v380_v20 = vld [vmem:[#allocation2 + $0x2b0] sm:$0xff] }
  0x95   :  { %v3153_v52 = vpop.permute.xlu0 %3152  ;;  %502 = vmatprep.mubr.f32.mxu0 %v111_v24  ;;  %v112_v18 = vsel %vm110_vm2, %v3159_v23, %v3160_v22  ;;  %v398_v24 = vld [vmem:[#allocation2 + $0x340] sm:$0xff] }
  0x96   :  { %v3155_v27 = vunpack.i.h.bf16 %v3153_v52  ;;  %v3154_v28 = vunpack.i.l.bf16 %v3153_v52  ;;  %503 = vmatmul.mubr.f32.vlgmr.msra.gmra.mxu0 %v3527_v0  ;;  %v3719_v29 = vpop.permute.xlu1 %3162  ;;  %v413_v52 = vld [vmem:[#allocation2 + $0x3b8] sm:$0xff] }
  0x97   :  { %2485 = vmatpush3.msra.mxu0 %v373_v25  ;;  %507 = vmatprep.mubr.f32.mxu0 %v112_v18  ;;  %v3165_v59 = vunpack.i.h.bf16 %v3719_v29  ;;  %v3164_v60 = vunpack.i.l.bf16 %v3719_v29  ;;  %v364_v25 = vld [vmem:[#allocation2 + $0x230] sm:$0xff]  ;;  %v397_v29 = vld [vmem:[#allocation2 + $0x338] sm:$0xff] }
  0x98   :  { %2486 = vmatprep.subr.mxu0 %v388_v26  ;;  %v136_v33 = vsel %vm135_vm3, %v3154_v28, %v3155_v27  ;;  %v379_v26 = vld [vmem:[#allocation2 + $0x2a8] sm:$0xff] }
  0x99   :  { %2487 = vmatpush3.msra.mxu0 %v372_v30  ;;  %588 = vmatmul.mubr.f32.vlgmr.msra.gmra.mxu1 %v136_v33  ;;  %v3722_v34 = vpop.permute.xlu0 %3167  ;;  %v113_v16 = vsel %vm110_vm2, %v3164_v60, %v3165_v59  ;;  %v363_v30 = vld [vmem:[#allocation2 + $0x228] sm:$0xff]  ;;  %v393_v59 = vld [vmem:[#allocation2 + $0x318] sm:$0xff] }
  0x9a   :  { %2488 = vmatprep.subr.mxu0 %v387_v31  ;;  %2529 = vmatpush3.msra.mxu1 %v405_v32  ;;  %v3724_v0 = vpop.permute.xlu1 %3172  ;;  %v3170_v22 = vunpack.i.h.bf16 %v3722_v34  ;;  %v3169_v23 = vunpack.i.l.bf16 %v3722_v34  ;;  %v412_v32 = vld [vmem:[#allocation2 + $0x3b0] sm:$0xff] }
  0x9b   :  { %2489 = vmatpush3.msra.mxu0 %v371_v6  ;;  %2530 = vmatprep.subr.mxu1 %v420_v13  ;;  %v3174_v6 = vunpack.i.l.bf16 %v3724_v0  ;;  %v378_v13 = vld [vmem:[#allocation2 + $0x2a0] sm:$0xff]  ;;  %v396_v34 = vld [vmem:[#allocation2 + $0x330] sm:$0xff] }
  0x9c   :  { %2490 = vmatprep.subr.mxu0 %v386_v36  ;;  %2531 = vmatpush3.msra.mxu1 %v404_v37  ;;  %v114_v33 = vsel %vm110_vm2, %v3169_v23, %v3170_v22  ;;  %v362_v37 = vld [vmem:[#allocation2 + $0x220] sm:$0xff] }
  0x9d   :  { %2491 = vmatpush3.msra.mxu0 %v370_v38  ;;  %2532 = vmatprep.subr.mxu1 %v419_v39  ;;  %v3726_v47 = vpop.permute.xlu0 %173  ;;  %v411_v39 = vld [vmem:[#allocation2 + $0x3a8] sm:$0xff] }
  0x9e   :  { %2492 = vmatprep.subr.mxu0 %v385_v40  ;;  %2533 = vmatpush3.msra.mxu1 %v403_v41  ;;  %v3728_v49 = vpop.permute.xlu1 %175 }
  0x9f   :  { %2493 = vmatpush3.msra.mxu0 %v369_v42  ;;  %2534 = vmatprep.subr.mxu1 %v418_v44  ;;  %v395_v44 = vld [vmem:[#allocation2 + $0x328] sm:$0xff]  ;;  %v3779_v23 = vsel %vm110_vm2, %v3726_v47, %v3728_v49 }
  0xa0   :  { %2494 = vmatprep.subr.mxu0 %v384_v46  ;;  %2535 = vmatpush3.msra.mxu1 %v402_v48  ;;  %v361_v46 = vld [vmem:[#allocation2 + $0x218] sm:$0xff]  ;;  %v410_v48 = vld [vmem:[#allocation2 + $0x3a0] sm:$0xff]  ;;  %4399 = vst [vmem:[#allocation11_spill] sm:$0xff] %v3779_v23 }
  0xa1   :  { %2495 = vmatpush3.msra.mxu0 %v368_v50  ;;  %2536 = vmatprep.subr.mxu1 %v417_v51  ;;  %v3178_v62 = vpop.permute.xlu0 %3177 }
  0xa2   :  { %2496 = vmatprep.subr.mxu0 %v383_v54  ;;  %2537 = vmatpush3.msra.mxu1 %v401_v55  ;;  %v3183_v1 = vpop.permute.xlu1 %3182  ;;  %v3180_v8 = vunpack.i.h.bf16 %v3178_v62  ;;  %v3179_v10 = vunpack.i.l.bf16 %v3178_v62  ;;  %v394_v54 = vld [vmem:[#allocation2 + $0x320] sm:$0xff]  ;;  %v360_v55 = vld [vmem:[#allocation2 + $0x210] sm:$0xff] }
  0xa3   :  { %2497 = vmatpush3.msra.mxu0 %v367_v56  ;;  %2538 = vmatprep.subr.mxu1 %v416_v57  ;;  %v3185_v27 = vunpack.i.h.bf16 %v3183_v1  ;;  %v3184_v28 = vunpack.i.l.bf16 %v3183_v1  ;;  %v409_v56 = vld [vmem:[#allocation2 + $0x398] sm:$0xff]  ;;  %v375_v57 = vld [vmem:[#allocation2 + $0x288] sm:$0xff]  ;;  %v408_v62 = vld [vmem:[#allocation2 + $0x390] sm:$0xff] }
  0xa4   :  { %2498 = vmatprep.subr.mxu0 %v382_v61  ;;  %2539 = vmatpush3.msra.mxu1 %v400_v63  ;;  %v359_v61 = vld [vmem:[#allocation2 + $0x208] sm:$0xff]  ;;  %v374_v1 = vld [vmem:[#allocation2 + $0x280] sm:$0xff] }
  0xa5   :  { %508 = vmatmul.mubr.f32.gmra.mxu0 %v3537_v2  ;;  %2540 = vmatprep.subr.mxu1 %v415_v3  ;;  %v3734_v17 = vpop.permute.xlu0 %3187  ;;  %v137_v2 = vsel %vm135_vm3, %v3179_v10, %v3180_v8  ;;  %v138_v36 = vsel %vm135_vm3, %v3184_v28, %v3185_v27  ;;  %v392_v3 = vld [vmem:[#allocation2 + $0x310] sm:$0xff]  ;;  %v407_v8 = vld [vmem:[#allocation2 + $0x388] sm:$0xff] }
  0xa6   :  { %2499 = vmatpush3.msra.mxu0 %v366_v4  ;;  %2541 = vmatpush3.msra.mxu1 %v399_v7  ;;  %v3736_v21 = vpop.permute.xlu1 %3192  ;;  %v3190_v40 = vunpack.i.h.bf16 %v3734_v17  ;;  %v3189_v41 = vunpack.i.l.bf16 %v3734_v17 }
  0xa7   :  { %2500 = vmatprep.subr.mxu0 %v381_v11  ;;  %2542 = vmatprep.subr.mxu1 %v414_v14  ;;  %v3195_v4 = vunpack.i.h.bf16 %v3736_v21  ;;  %v3194_v7 = vunpack.i.l.bf16 %v3736_v21  ;;  %v391_v14 = vld [vmem:[#allocation2 + $0x308] sm:$0xff]  ;;  %v406_v21 = vld [vmem:[#allocation2 + $0x380] sm:$0xff] }
  0xa8   :  { %2501 = vmatpush3.msra.mxu0 %v365_v15  ;;  %512 = vmatprep.mubr.f32.mxu0 %v113_v16 }
  0xa9   :  { %2502 = vmatprep.subr.mxu0 %v380_v20  ;;  %592 = vmatprep.mubr.f32.mxu1 %v3629_v53  ;;  %v3742_v18 = vpop.permute.xlu0 %3197  ;;  %v3175_v53 = vunpack.i.h.bf16 %v3724_v0  ;;  %v377_v0 = vld [vmem:[#allocation2 + $0x298] sm:$0xff] }
  0xaa   :  { %2543 = vmatpush3.msra.mxu1 %v398_v24  ;;  %513 = vmatmul.mubr.f32.gmra.mxu0 %v3549_v5  ;;  %v3745_v31 = vpop.permute.xlu1 %177  ;;  %v3200_v10 = vunpack.i.h.bf16 %v3742_v18  ;;  %v3199_v11 = vunpack.i.l.bf16 %v3742_v18  ;;  %v437_v20 = vld [vmem:[#allocation2 + $0x478] sm:$0xff]  ;;  %v390_v24 = vld [vmem:[#allocation2 + $0x300] sm:$0xff] }
  0xab   :  { %593 = vmatmul.mubr.f32.gmra.mxu1 %v137_v2  ;;  %2503 = vmatpush3.msra.mxu0 %v364_v25  ;;  %v213_v42 = vsel %vm135_vm3, %v3174_v6, %v3175_v53 }
  0xac   :  { %2544 = vmatprep.subr.mxu1 %v413_v52  ;;  %2504 = vmatprep.subr.mxu0 %v379_v26  ;;  %v262_v52 = vsel %vm110_vm2, %v3194_v7, %v3195_v4  ;;  %v436_v26 = vld [vmem:[#allocation2 + $0x470] sm:$0xff]  ;;  %v214_v18 = vsel %vm135_vm3, %v3199_v11, %v3200_v10  ;;  %v3839_v11 = vld [vmem:[%s4383_s7 + $0x68] sm:$0xff] }
  0xad   :  { %2545 = vmatpush3.msra.mxu1 %v397_v29  ;;  %2505 = vmatpush3.msra.mxu0 %v363_v30  ;;  %v3750_v5 = vpop.permute.xlu0 %179  ;;  %v435_v30 = vld [vmem:[#allocation2 + $0x468] sm:$0xff]  ;;  %v3832_v10 = vld [vmem:[%s4383_s7 + $0x70] sm:$0xff] }
  0xae   :  { %2546 = vmatprep.subr.mxu1 %v412_v32  ;;  %517 = vmatprep.mubr.f32.mxu0 %v114_v33  ;;  %v3753_v38 = vpop.permute.xlu1 %3202  ;;  %v3792_v29 = vsel %vm110_vm2, %v3745_v31, %v3750_v5  ;;  %v433_v5 = vld [vmem:[#allocation2 + $0x458] sm:$0xff] }
  0xaf   :  { %2506 = vmatprep.subr.mxu0 %v378_v13  ;;  %597 = vmatprep.mubr.f32.mxu1 %v3658_v19  ;;  %v376_v19 = vld [vmem:[#allocation2 + $0x290] sm:$0xff]  ;;  %v3205_v16 = vunpack.i.h.bf16 %v3753_v38  ;;  %v3204_v17 = vunpack.i.l.bf16 %v3753_v38  ;;  %4400 = vst [vmem:[#allocation12_spill] sm:$0xff] %v3792_v29  ;;  %v434_v13 = vld [vmem:[#allocation2 + $0x460] sm:$0xff] }
  0xb0   :  { %2547 = vmatpush3.msra.mxu1 %v396_v34  ;;  %518 = vmatmul.mubr.f32.gmra.mxu0 %v3568_v12  ;;  %v139_v12 = vsel %vm135_vm3, %v3189_v41, %v3190_v40  ;;  %v432_v40 = vld [vmem:[#allocation2 + $0x450] sm:$0xff] }
  0xb1   :  { %598 = vmatmul.mubr.f32.gmra.mxu1 %v138_v36  ;;  %2507 = vmatpush3.msra.mxu0 %v362_v37  ;;  %v3760_v50 = vpop.permute.xlu0 %3207  ;;  %v263_v28 = vsel %vm110_vm2, %v3204_v17, %v3205_v16  ;;  %v3860_v16 = vld [vmem:[%s4383_s7 + $0x50] sm:$0xff]  ;;  %v3867_v17 = vld [vmem:[%s4383_s7 + $0x48] sm:$0xff] }
  0xb2   :  { %2548 = vmatprep.subr.mxu1 %v411_v39  ;;  %2508 = vmatprep.subr.mxu0 %v377_v0  ;;  %v3762_v51 = vpop.permute.xlu1 %181  ;;  %v3210_v2 = vunpack.i.h.bf16 %v3760_v50  ;;  %v3209_v25 = vunpack.i.l.bf16 %v3760_v50  ;;  %v428_v50 = vld [vmem:[#allocation2 + $0x430] sm:$0xff] }
  0xb3   :  { %672 = vmatprep.mubr.f32.mxu0 %v213_v42  ;;  %2549 = vmatpush3.msra.mxu1 %v395_v44  ;;  %v431_v44 = vld [vmem:[#allocation2 + $0x448] sm:$0xff] }
  0xb4   :  { %2509 = vmatpush3.msra.mxu0 %v361_v46  ;;  %2550 = vmatprep.subr.mxu1 %v410_v48  ;;  %v215_v6 = vsel %vm135_vm3, %v3209_v25, %v3210_v2  ;;  %v430_v46 = vld [vmem:[#allocation2 + $0x440] sm:$0xff]  ;;  %v429_v48 = vld [vmem:[#allocation2 + $0x438] sm:$0xff] }
  0xb5   :  { %2510 = vmatprep.subr.mxu0 %v376_v19  ;;  %602 = vmatprep.mubr.f32.mxu1 %v3692_v43  ;;  %v3766_v60 = vpop.permute.xlu0 %183  ;;  %v358_v43 = vld [vmem:[#allocation2 + $0x200] sm:$0xff]  ;;  %v427_v19 = vld [vmem:[#allocation2 + $0x428] sm:$0xff]  ;;  %v3909_v25 = vld [vmem:[%s4383_s7 + $0x18] sm:$0xff] }
  0xb6   :  { %2551 = vmatpush3.msra.mxu1 %v394_v54  ;;  %2511 = vmatpush3.msra.mxu0 %v360_v55  ;;  %v3768_v63 = vpop.permute.xlu1 %3212  ;;  %v425_v54 = vld [vmem:[#allocation2 + $0x418] sm:$0xff]  ;;  %v424_v55 = vld [vmem:[#allocation2 + $0x410] sm:$0xff]  ;;  %v3902_v2 = vld [vmem:[%s4383_s7 + $0x20] sm:$0xff] }
  0xb7   :  { %603 = vmatmul.mubr.f32.gmra.mxu1 %v139_v12  ;;  %2552 = vmatprep.subr.mxu1 %v409_v56  ;;  %v3215_v47 = vunpack.i.h.bf16 %v3768_v63  ;;  %v3214_v49 = vunpack.i.l.bf16 %v3768_v63 }
  0xb8   :  { %2512 = vmatprep.subr.mxu0 %v375_v57  ;;  %2553 = vmatpush3.msra.mxu1 %v393_v59  ;;  %v423_v57 = vld [vmem:[#allocation2 + $0x408] sm:$0xff] }
  0xb9   :  { %2513 = vmatpush3.msra.mxu0 %v359_v61  ;;  %2554 = vmatprep.subr.mxu1 %v408_v62  ;;  %v3218_v15 = vpop.permute.xlu0 %3217  ;;  %v264_v31 = vsel %vm110_vm2, %v3214_v49, %v3215_v47  ;;  %v422_v62 = vld [vmem:[#allocation2 + $0x400] sm:$0xff] }
  0xba   :  { %2514 = vmatprep.subr.mxu0 %v374_v1  ;;  %2555 = vmatpush3.msra.mxu1 %v392_v3  ;;  %v186_v22 = vpop.permute.xlu1 %185  ;;  %v3220_v33 = vunpack.i.h.bf16 %v3218_v15  ;;  %v3219_v53 = vunpack.i.l.bf16 %v3218_v15  ;;  %v3853_v15 = vld [vmem:[%s4383_s7 + $0x58] sm:$0xff] }
  0xbb   :  { %2515 = vmatpush3.msra.mxu0 %v358_v43  ;;  %2556 = vmatprep.subr.mxu1 %v407_v8  ;;  %v4385_v43 = vmov 0.0   ;;  %v3826_v8 = vld [vmem:[%s4383_s7 + $0x78] sm:$0xff] }
  0xbc   :  { %673 = vmatmul.mubr.f32.vlgmr.msra.gmra.mxu0 %v3779_v23  ;;  %2557 = vmatpush3.msra.mxu1 %v391_v14  ;;  %v216_v38 = vsel %vm135_vm3, %v3219_v53, %v3220_v33  ;;  %v3846_v14 = vld [vmem:[%s4383_s7 + $0x60] sm:$0xff] }
  0xbd   :  { %2876 = vmatprep.subr.mxu0 %v437_v20  ;;  %2558 = vmatprep.subr.mxu1 %v406_v21  ;;  %v188_v27 = vpop.permute.xlu0 %187  ;;  %v3881_v21 = vld [vmem:[%s4383_s7 + $0x38] sm:$0xff] }
  0xbe   :  { %2877 = vmatpush3.msra.mxu0 %v437_v20  ;;  %2559 = vmatpush3.msra.mxu1 %v390_v24  ;;  %v3223_v32 = vpop.permute.xlu1 %3222  ;;  %v3808_v42 = vsel %vm110_vm2, %v186_v22, %v188_v27  ;;  %v3874_v20 = vld [vmem:[%s4383_s7 + $0x40] sm:$0xff]  ;;  %v3888_v22 = vld [vmem:[%s4383_s7 + $0x30] sm:$0xff]  ;;  %v3895_v24 = vld [vmem:[%s4383_s7 + $0x28] sm:$0xff] }
  0xbf   :  { %757 = vmatprep.mubr.f32.mxu1 %v262_v52  ;;  %2878 = vmatprep.subr.mxu0 %v436_v26  ;;  %v3225_v36 = vunpack.i.h.bf16 %v3223_v32  ;;  %v3224_v37 = vunpack.i.l.bf16 %v3223_v32  ;;  %4402 = vst [vmem:[#allocation14_spill] sm:$0xff] %v3808_v42  ;;  %v3916_v52 = vld [vmem:[%s4383_s7 + $0x10] sm:$0xff] }
  0xc0   :  { %677 = vmatprep.mubr.f32.mxu0 %v214_v18  ;;  %758 = vmatmul.mubr.f32.vlgmr.msra.gmra.mxu1 %v3616_v45  ;;  %v3801_v45 = vsel %vm110_vm2, %v3762_v51, %v3766_v60  ;;  %4403 = vst [vmem:[#allocation15_spill] sm:$0xff] %v3916_v52 }
  0xc1   :  { %2879 = vmatpush3.msra.mxu0 %v436_v26  ;;  %762 = vmatprep.mubr.f32.mxu1 %v263_v28  ;;  %v3228_v34 = vpop.permute.xlu0 %3227  ;;  %4401 = vst [vmem:[#allocation13_spill] sm:$0xff] %v3801_v45  ;;  %v265_v41 = vsel %vm110_vm2, %v3224_v37, %v3225_v36  ;;  %v3923_v26 = vld [vmem:[%s4383_s7 + $0x8] sm:$0xff] }
  0xc2   :  { %678 = vmatmul.mubr.f32.gmra.mxu0 %v3792_v29  ;;  %2880 = vmatprep.subr.mxu0 %v435_v30  ;;  %v3230_v39 = vunpack.i.h.bf16 %v3228_v34  ;;  %v3229_v0 = vunpack.i.l.bf16 %v3228_v34  ;;  %v3233_v51 = vpop.permute.xlu1 %3232  ;;  %4404 = vst [vmem:[#allocation16_spill] sm:$0xff] %v3923_v26 }
  0xc3   :  { %2881 = vmatpush3.msra.mxu0 %v435_v30  ;;  %682 = vmatprep.mubr.f32.mxu0 %v215_v6  ;;  %v3235_v56 = vunpack.i.h.bf16 %v3233_v51 }
  0xc4   :  { %2882 = vmatprep.subr.mxu0 %v434_v13  ;;  %763 = vmatmul.mubr.f32.gmra.mxu1 %v3646_v9  ;;  %v286_v9 = vsel %vm135_vm3, %v3229_v0, %v3230_v39 }
  0xc5   :  { %2883 = vmatpush3.msra.mxu0 %v434_v13  ;;  %767 = vmatprep.mubr.f32.mxu1 %v264_v31  ;;  %v3238_v12 = vpop.permute.xlu0 %3237 }
  0xc6   :  { %683 = vmatmul.mubr.f32.gmra.mxu0 %v3801_v45  ;;  %2884 = vmatprep.subr.mxu0 %v433_v5  ;;  %v3240_v59 = vunpack.i.h.bf16 %v3238_v12  ;;  %v3239_v60 = vunpack.i.l.bf16 %v3238_v12  ;;  %v3243_v61 = vpop.permute.xlu1 %3242 }
  0xc7   :  { %2885 = vmatpush3.msra.mxu0 %v433_v5  ;;  %687 = vmatprep.mubr.f32.mxu0 %v216_v38  ;;  %v3245_v63 = vunpack.i.h.bf16 %v3243_v61  ;;  %v3244_v1 = vunpack.i.l.bf16 %v3243_v61 }
  0xc8   :  { %2886 = vmatprep.subr.mxu0 %v432_v40  ;;  %768 = vmatmul.mubr.f32.gmra.mxu1 %v3682_v35  ;;  %v426_v35 = vld [vmem:[#allocation2 + $0x420] sm:$0xff]  ;;  %v288_v4 = vsel %vm135_vm3, %v3239_v60, %v3240_v59 }
  0xc9   :  { %2887 = vmatpush3.msra.mxu0 %v432_v40  ;;  %772 = vmatprep.mubr.f32.mxu1 %v265_v41  ;;  %v289_v7 = vsel %vm135_vm3, %v3244_v1, %v3245_v63 }
  0xca   :  { %688 = vmatmul.mubr.f32.gmra.mxu0 %v3808_v42  ;;  %2888 = vmatprep.subr.mxu0 %v431_v44 }
  0xcb   :  { %2889 = vmatpush3.msra.mxu0 %v431_v44  ;;  %2908 = vmatprep.mubr.f32.mxu0 %v286_v9 }
  0xcc   :  { %2890 = vmatprep.subr.mxu0 %v430_v46  ;;  %773 = vmatmul.mubr.f32.gmra.mxu1 %v3701_v58  ;;  %v3234_v58 = vunpack.i.l.bf16 %v3233_v51 }
  0xcd   :  { %2891 = vmatpush3.msra.mxu0 %v430_v46  ;;  %2914 = vmatprep.subr.mxu1 %v4385_v43 }
  0xce   :  { %2892 = vmatprep.subr.mxu0 %v429_v48  ;;  %v287_v3 = vsel %vm135_vm3, %v3234_v58, %v3235_v56  ;;  %2922 = vmatprep.mubr.msk.f32.mxu1 %vm3464_vm4, %v4385_v43 }
  0xcf   :  { %2893 = vmatpush3.msra.mxu0 %v429_v48 }
  0xd0   :  { %2894 = vmatprep.subr.mxu0 %v428_v50 }
  0xd1   :  { %2895 = vmatpush3.msra.mxu0 %v428_v50 }
  0xd2   :  { %2896 = vmatprep.subr.mxu0 %v427_v19 }
  0xd3   :  { %2897 = vmatpush3.msra.mxu0 %v427_v19 }
  0xd4   :  { %2898 = vmatprep.subr.mxu0 %v426_v35 }
  0xd5   :  { %2899 = vmatpush3.msra.mxu0 %v426_v35 }
  0xd6   :  { %2900 = vmatprep.subr.mxu0 %v425_v54 }
  0xd7   :  { %2901 = vmatpush3.msra.mxu0 %v425_v54 }
  0xd8   :  { %2902 = vmatprep.subr.mxu0 %v424_v55 }
  0xd9   :  { %2903 = vmatpush3.msra.mxu0 %v424_v55 }
  0xda   :  { %2904 = vmatprep.subr.mxu0 %v423_v57 }
  0xdb   :  { %2905 = vmatpush3.msra.mxu0 %v423_v57 }
  0xdc   :  { %2906 = vmatprep.subr.mxu0 %v422_v62 }
  0xdd   :  { %2907 = vmatpush3.msra.mxu0 %v422_v62 }
  0xde   :  { %2909 = vmatmul.mubr.f32.vlgmr.msra.gmra.mxu0 %v287_v3  ;;  %2971 = vmatprep.subr.mxu0 %v4385_v43 }
  0xdf   :  { %2911 = vmatprep.mubr.f32.mxu0 %v288_v4  ;;  %2972 = vmatpush3.msra.mxu0 %v3826_v8 }
  0xe0   :  { %2973 = vmatprep.subr.mxu0 %v4385_v43 }
  0xe1   :  { %2974 = vmatpush3.msra.mxu0 %v3832_v10 }
  0xe2   :  { %2912 = vmatmul.mubr.f32.gmra.mxu0 %v289_v7  ;;  %2975 = vmatprep.subr.mxu0 %v4385_v43 }
  0xe3   :  { %3003 = vmatprep.mubr.msk.f32.mxu0 %vm3464_vm4, %v4385_v43  ;;  %2976 = vmatpush3.msra.mxu0 %v3839_v11 }
  0xe4   :  { %2977 = vmatprep.subr.mxu0 %v4385_v43 }
  0xe5   :  { %2978 = vmatpush3.msra.mxu0 %v3846_v14 }
  0xe6   :  { %2979 = vmatprep.subr.mxu0 %v4385_v43 }
  0xe7   :  { %2980 = vmatpush3.msra.mxu0 %v3853_v15 }
  0xe8   :  { %2981 = vmatprep.subr.mxu0 %v4385_v43 }
  0xe9   :  { %2982 = vmatpush3.msra.mxu0 %v3860_v16 }
  0xea   :  { %2983 = vmatprep.subr.mxu0 %v4385_v43 }
  0xeb   :  { %2984 = vmatpush3.msra.mxu0 %v3867_v17 }
  0xec   :  { %2985 = vmatprep.subr.mxu0 %v4385_v43 }
  0xed   :  { %2986 = vmatpush3.msra.mxu0 %v3874_v20 }
  0xee   :  { %2987 = vmatprep.subr.mxu0 %v4385_v43 }
  0xef   :  { %2988 = vmatpush3.msra.mxu0 %v3881_v21 }
  0xf0   :  { %2989 = vmatprep.subr.mxu0 %v4385_v43 }
  0xf1   :  { %2990 = vmatpush3.msra.mxu0 %v3888_v22 }
  0xf2   :  { %2991 = vmatprep.subr.mxu0 %v4385_v43 }
  0xf3   :  { %2992 = vmatpush3.msra.mxu0 %v3895_v24 }
  0xf4   :  { %2993 = vmatprep.subr.mxu0 %v4385_v43 }
  0xf5   :  { %2994 = vmatpush3.msra.mxu0 %v3902_v2 }
  0xf6   :  { %2995 = vmatprep.subr.mxu0 %v4385_v43 }
  0xf7   :  { %2996 = vmatpush3.msra.mxu0 %v3909_v25 }
  0xf8   :  { %2997 = vmatprep.subr.mxu0 %v4385_v43 }
  0xf9   :  { %2998 = vmatpush3.msra.mxu0 %v3916_v52 }
  0xfa   :  { %2999 = vmatprep.subr.mxu0 %v4385_v43 }
  0xfb   :  { %3000 = vmatpush3.msra.mxu0 %v3923_v26 }
  0xfc   :  { %3001 = vmatprep.subr.mxu0 %v4385_v43 }
 0x156   :  { %v2428_v18 = vpop.f32.mrf.mxu0 }
 0x158   :  { %v2429_v27 = vpop.f32.mrf.mxu0 }
 0x159   :  { %v2472_v47 = vpop.f32.mrf.mxu1  ;;  %v2430_v45 = vadd.f32 %v2429_v27, %v2428_v18  ;;  %v4405_v18 = vmov 0.0  }
 0x15b   :  { %v2473_v30 = vpop.f32.mrf.mxu1 }
 0x15c   :  { %v2474_v3 = vadd.f32 %v2473_v30, %v2472_v47 }
 0x165   :  { %v2431_v49 = vpop.f32.mrf.mxu0 }
 0x167   :  { %v2432_v28 = vpop.f32.mrf.mxu0 }
 0x168   :  { %v2433_v61 = vadd.f32 %v2432_v28, %v2431_v49 }
 0x16a   :  { %v2434_v33 = vpop.f32.mrf.mxu0 }
 0x16b   :  { %v2475_v32 = vpop.f32.mrf.mxu1 }
 0x16c   :  { %v2435_v6 = vpop.f32.mrf.mxu0 }
 0x16d   :  { %v2476_v53 = vpop.f32.mrf.mxu1  ;;  %v2436_v58 = vadd.f32 %v2435_v6, %v2434_v33  ;;  %v590_v33 = vadd.f32 %v2474_v3, %v2430_v45  ;;  %v4393_v45 = vmov 1.0  }
 0x16e   :  { %v2477_v62 = vadd.f32 %v2476_v53, %v2475_v32 }
 0x170   :  { %v2437_v34 = vpop.f32.mrf.mxu0  ;;  %v595_v23 = vadd.f32 %v2477_v62, %v2433_v61 }
 0x171   :  { %v2478_v13 = vpop.f32.mrf.mxu1 }
 0x172   :  { %v2438_v37 = vpop.f32.mrf.mxu0 }
 0x173   :  { %v2479_v36 = vpop.f32.mrf.mxu1  ;;  %v2439_v12 = vadd.f32 %v2438_v37, %v2437_v34 }
 0x174   :  { %v2480_v57 = vadd.f32 %v2479_v36, %v2478_v13 }
 0x176   :  { %v600_v4 = vadd.f32 %v2480_v57, %v2436_v58 }
 0x177   :  { %v2481_v31 = vpop.f32.mrf.mxu1 }
 0x179   :  { %v2482_v38 = vpop.f32.mrf.mxu1 }
 0x17a   :  { %v2483_v56 = vadd.f32 %v2482_v38, %v2481_v31 }
 0x17c   :  { %v2516_v5 = vpop.f32.mrf.mxu0  ;;  %v605_v63 = vadd.f32 %v2483_v56, %v2439_v12  ;;  %v2383_v56 = vld [vmem:[%s4379_s3] ss:$0 sm:$0xff] }
 0x17e   :  { %v2517_v39 = vpop.f32.mrf.mxu0 }
 0x17f   :  { %v2518_v26 = vadd.f32 %v2517_v39, %v2516_v5 }
 0x180   :  { %v2560_v0 = vpop.f32.mrf.mxu1 }
 0x181   :  { %v675_v28 = vadd.f32 %v2518_v26, %v590_v33 }
 0x182   :  { %v2519_v40 = vpop.f32.mrf.mxu0  ;;  %v2561_v41 = vpop.f32.mrf.mxu1 }
 0x183   :  { %v2562_v32 = vadd.f32 %v2561_v41, %v2560_v0 }
 0x184   :  { %v2520_v44 = vpop.f32.mrf.mxu0  ;;  %v2563_v9 = vpop.f32.mrf.mxu1 }
 0x185   :  { %v2521_v7 = vadd.f32 %v2520_v44, %v2519_v40  ;;  %v760_v5 = vadd.f32 %v2562_v32, %v675_v28 }
 0x186   :  { %v2522_v46 = vpop.f32.mrf.mxu0  ;;  %v2564_v48 = vpop.f32.mrf.mxu1 }
 0x187   :  { %v680_v6 = vadd.f32 %v2521_v7, %v595_v23  ;;  %v2565_v13 = vadd.f32 %v2564_v48, %v2563_v9 }
 0x188   :  { %v2523_v50 = vpop.f32.mrf.mxu0  ;;  %v2566_v19 = vpop.f32.mrf.mxu1 }
 0x189   :  { %v2524_v1 = vadd.f32 %v2523_v50, %v2522_v46  ;;  %v765_v31 = vadd.f32 %v2565_v13, %v680_v6 }
 0x18a   :  { %v2525_v35 = vpop.f32.mrf.mxu0  ;;  %v2567_v51 = vpop.f32.mrf.mxu1 }
 0x18b   :  { %v685_v52 = vadd.f32 %v2524_v1, %v600_v4  ;;  %v2568_v34 = vadd.f32 %v2567_v51, %v2566_v19 }
 0x18c   :  { %v2526_v54 = vpop.f32.mrf.mxu0  ;;  %v2569_v55 = vpop.f32.mrf.mxu1 }
 0x18d   :  { %v2527_v59 = vadd.f32 %v2526_v54, %v2525_v35  ;;  %v770_v47 = vadd.f32 %v2568_v34, %v685_v52  ;;  %v2382_v35 = vld [vmem:[%s4378_s2] ss:$0 sm:$0xff] }
 0x18e   :  { %v2570_v60 = vpop.f32.mrf.mxu1 }
 0x18f   :  { %v690_v43 = vadd.f32 %v2527_v59, %v605_v63  ;;  %v2571_v42 = vadd.f32 %v2570_v60, %v2569_v55 }
 0x191   :  { %v775_v36 = vadd.f32 %v2571_v42, %v690_v43  ;;  %v4407_v42 = vld [vmem:[#allocation16_spill] sm:$0xff]  ;;  %v70_v43 = vld [vmem:[%s4383_s7] sm:$0xff] }
 0x192   :  { %3002 = vmatpush3.msra.mxu0 %v70_v43 }
 0x19e   :  { %v2910_v29 = vpop.f32.mrf.mxu0 }
 0x19f   :  { %v850_v27 = vadd.f32 %v2910_v29, %v765_v31  ;;  %v4406_v29 = vld [vmem:[#allocation15_spill] sm:$0xff]  ;;  %v1518_v31 = vld [vmem:[#allocation5 + $0x1f8] sm:$0xff] }
 0x1a0   :  { %v844_v37 = vpop.f32.mrf.mxu0  ;;  %2680 = vmatprep.subr.mxu0 %v1518_v31  ;;  %v1471_v31 = vld [vmem:[#allocation5 + $0x80] sm:$0xff] }
 0x1a1   :  { %v845_v23 = vadd.f32 %v844_v37, %v760_v5  ;;  %v1470_v5 = vld [vmem:[#allocation5 + $0x78] sm:$0xff] }
 0x1a2   :  { %v2913_v49 = vpop.f32.mrf.mxu0 }
 0x1a3   :  { %v3928_v53 = vadd.f32 %v2913_v49, %v775_v36 }
 0x1a4   :  { %v854_v30 = vpop.f32.mrf.mxu0 }
 0x1a5   :  { %v855_v38 = vadd.f32 %v854_v30, %v770_v47  ;;  %2915 = vmatpush3.msra.mxu1 %v3928_v53 }
 0x1a6   :  { %2916 = vmatprep.subr.mxu1 %v4405_v18 }
 0x1a7   :  { %2917 = vmatpush3.msra.mxu1 %v855_v38 }
 0x1a8   :  { %2918 = vmatprep.subr.mxu1 %v4405_v18 }
 0x1a9   :  { %2919 = vmatpush3.msra.mxu1 %v850_v27 }
 0x1aa   :  { %2920 = vmatprep.subr.mxu1 %v4405_v18 }
 0x1ab   :  { %2921 = vmatpush3.msra.mxu1 %v845_v23 }
 0x1ac   :  { %2923 = vmatmul.mubr.msk.f32.vlgmr.msra.gmra.mxu1 %vm863_vm5, %v4393_v45  ;;  %2925 = vmatprep.subr.mxu1 %v4405_v18 }
 0x1ad   :  { %2926 = vmatpush3.msra.mxu1 %v3826_v8  ;;  %2957 = vmatprep.mubr.msk.f32.mxu1 %vm3464_vm4, %v4405_v18 }
 0x1ae   :  { %2927 = vmatprep.subr.mxu1 %v4405_v18 }
 0x1af   :  { %2928 = vmatpush3.msra.mxu1 %v3832_v10 }
 0x1b0   :  { %2929 = vmatprep.subr.mxu1 %v4405_v18 }
 0x1b1   :  { %2930 = vmatpush3.msra.mxu1 %v3839_v11  ;;  %v1008_v11 = vlaneseq }
 0x1b2   :  { %2931 = vmatprep.subr.mxu1 %v4405_v18 }
 0x1b3   :  { %2932 = vmatpush3.msra.mxu1 %v3846_v14  ;;  %v1009_v14 = vshrl.u32 %v1008_v11, 7  ;;  %v1500_v11 = vld [vmem:[#allocation5 + $0x168] sm:$0xff] }
 0x1b4   :  { %2933 = vmatprep.subr.mxu1 %v4405_v18 }
 0x1b5   :  { %2934 = vmatpush3.msra.mxu1 %v3853_v15  ;;  %v3975_v15 = vsub.s32 0, %v1009_v14  ;;  %v1468_v14 = vld [vmem:[#allocation5 + $0x68] sm:$0xff] }
 0x1b6   :  { %2935 = vmatprep.subr.mxu1 %v4405_v18 }
 0x1b7   :  { %2936 = vmatpush3.msra.mxu1 %v3860_v16 }
 0x1b8   :  { %2937 = vmatprep.subr.mxu1 %v4405_v18 }
 0x1b9   :  { %2938 = vmatpush3.msra.mxu1 %v3867_v17 }
 0x1ba   :  { %2939 = vmatprep.subr.mxu1 %v4405_v18 }
 0x1bb   :  { %2940 = vmatpush3.msra.mxu1 %v3874_v20 }
 0x1bc   :  { %2941 = vmatprep.subr.mxu1 %v4405_v18 }
 0x1bd   :  { %2942 = vmatpush3.msra.mxu1 %v3881_v21 }
 0x1be   :  { %2943 = vmatprep.subr.mxu1 %v4405_v18 }
 0x1bf   :  { %2944 = vmatpush3.msra.mxu1 %v3888_v22 }
 0x1c0   :  { %2945 = vmatprep.subr.mxu1 %v4405_v18 }
 0x1c1   :  { %2946 = vmatpush3.msra.mxu1 %v3895_v24 }
 0x1c2   :  { %2947 = vmatprep.subr.mxu1 %v4405_v18 }
 0x1c3   :  { %2948 = vmatpush3.msra.mxu1 %v3902_v2 }
 0x1c4   :  { %2949 = vmatprep.subr.mxu1 %v4405_v18 }
 0x1c5   :  { %2950 = vmatpush3.msra.mxu1 %v3909_v25 }
 0x1c6   :  { %2951 = vmatprep.subr.mxu1 %v4405_v18 }
 0x1c7   :  { %2952 = vmatpush3.msra.mxu1 %v4406_v29  ;;  %v1485_v29 = vld [vmem:[#allocation5 + $0xf0] sm:$0xff] }
 0x1c8   :  { %2953 = vmatprep.subr.mxu1 %v4405_v18 }
 0x1c9   :  { %2954 = vmatpush3.msra.mxu1 %v4407_v42  ;;  %v1501_v42 = vld [vmem:[#allocation5 + $0x170] sm:$0xff] }
 0x1ca   :  { %2955 = vmatprep.subr.mxu1 %v4405_v18 }
 0x1cb   :  { %2956 = vmatpush3.msra.mxu1 %v70_v43  ;;  %v1469_v43 = vld [vmem:[#allocation5 + $0x70] sm:$0xff] }
 0x1cc   :  { %2960 = vmatprep.subr.mxu1 %v4405_v18 }
 0x26c   :  { %v933_v8 = vpop.f32.mrf.mxu1 }
 0x26d   :  { %2958 = vmatmul.mubr.f32.vlgmr.msra.gmra.mxu1 %v933_v8  ;;  %v1516_v8 = vld [vmem:[#allocation5 + $0x1e8] sm:$0xff] }
 0x26e   :  { %v2924_v10 = vpop.f32.mrf.mxu1  ;;  %2968 = vmatprep.mubr.msk.f32.mxu1 %vm3464_vm4, %v4405_v18 }
 0x26f   :  { %v1484_v10 = vld [vmem:[#allocation5 + $0xe8] sm:$0xff] }
 0x32d   :  { %v1003_v16 = vpop.f32.mrf.mxu1 }
 0x32e   :  { %v1007_v17 = vmul.f32 0.001953125, %v1003_v16  ;;  %v1515_v16 = vld [vmem:[#allocation5 + $0x1e0] sm:$0xff] }
 0x32f   :  { %v2959_v20 = vpop.f32.mrf.mxu1 }
 0x330   :  { %v1011_v21 = vrot.slane %v1007_v17, %v3975_v15  ;;  %v1483_v17 = vld [vmem:[#allocation5 + $0xe0] sm:$0xff] }
 0x331   :  { %v1499_v20 = vld [vmem:[#allocation5 + $0x160] sm:$0xff] }
 0x332   :  { %v1015_v22 = vsub.f32 %v3928_v53, %v1011_v21  ;;  %v1014_v24 = vsub.f32 %v855_v38, %v1011_v21  ;;  %v1013_v25 = vsub.f32 %v850_v27, %v1011_v21  ;;  %v1012_v26 = vsub.f32 %v845_v23, %v1011_v21  ;;  %v1486_v38 = vld [vmem:[#allocation5 + $0xf8] sm:$0xff]  ;;  %v1517_v23 = vld [vmem:[#allocation5 + $0x1f0] sm:$0xff]  ;;  %v1467_v21 = vld [vmem:[#allocation5 + $0x60] sm:$0xff] }
 0x333   :  { %v1502_v27 = vld [vmem:[#allocation5 + $0x178] sm:$0xff] }
 0x334   :  { %v1019_v2 = vmul.f32 %v1015_v22, %v1015_v22  ;;  %v1018_v52 = vmul.f32 %v1014_v24, %v1014_v24  ;;  %v1017_v39 = vmul.f32 %v1013_v25, %v1013_v25  ;;  %v1016_v0 = vmul.f32 %v1012_v26, %v1012_v26 }
 0x336   :  { %2961 = vmatpush3.msra.mxu1 %v1019_v2  ;;  %v1498_v2 = vld [vmem:[#allocation5 + $0x158] sm:$0xff] }
 0x337   :  { %2962 = vmatprep.subr.mxu1 %v4405_v18 }
 0x338   :  { %2963 = vmatpush3.msra.mxu1 %v1018_v52  ;;  %v1513_v52 = vld [vmem:[#allocation5 + $0x1d0] sm:$0xff] }
 0x339   :  { %2964 = vmatprep.subr.mxu1 %v4405_v18 }
 0x33a   :  { %2965 = vmatpush3.msra.mxu1 %v1017_v39  ;;  %v1497_v39 = vld [vmem:[#allocation5 + $0x150] sm:$0xff] }
 0x33b   :  { %2966 = vmatprep.subr.mxu1 %v4405_v18 }
 0x33c   :  { %2967 = vmatpush3.msra.mxu1 %v1016_v0  ;;  %v1465_v0 = vld [vmem:[#allocation5 + $0x50] sm:$0xff] }
 0x33d   :  { %2969 = vmatmul.mubr.msk.f32.vlgmr.msra.gmra.mxu1 %vm863_vm5, %v4393_v45  ;;  %2636 = vmatprep.subr.mxu1 %v1486_v38  ;;  %v1487_v38 = vld [vmem:[#allocation5 + $0x100] sm:$0xff] }
 0x33e   :  { %2637 = vmatpush3.msra.mxu1 %v1470_v5  ;;  %v1582_v5 = vld [vmem:[#allocation5 + $0x3f8] sm:$0xff] }
 0x33f   :  { %2638 = vmatprep.subr.mxu1 %v1485_v29 }
 0x340   :  { %2639 = vmatpush3.msra.mxu1 %v1469_v43 }
 0x341   :  { %2640 = vmatprep.subr.mxu1 %v1484_v10 }
 0x342   :  { %2641 = vmatpush3.msra.mxu1 %v1468_v14 }
 0x343   :  { %2642 = vmatprep.subr.mxu1 %v1483_v17 }
 0x344   :  { %2643 = vmatpush3.msra.mxu1 %v1467_v21 }
 0x3fd   :  { %v1086_v40 = vpop.f32.mrf.mxu1 }
 0x3fe   :  { %3004 = vmatmul.mubr.f32.vlgmr.msra.gmra.mxu0 %v1086_v40  ;;  %v1512_v40 = vld [vmem:[#allocation5 + $0x1c8] sm:$0xff] }
 0x3ff   :  { %v2970_v41 = vpop.f32.mrf.mxu1  ;;  %2681 = vmatpush3.msra.mxu0 %v1502_v27  ;;  %v1455_v27 = vld [vmem:[#allocation5] sm:$0xff] }
 0x400   :  { %2682 = vmatprep.subr.mxu0 %v1517_v23  ;;  %v1480_v41 = vld [vmem:[#allocation5 + $0xc8] sm:$0xff]  ;;  %v1550_v23 = vld [vmem:[#allocation5 + $0x2f8] sm:$0xff] }
 0x401   :  { %2683 = vmatpush3.msra.mxu0 %v1501_v42 }
 0x402   :  { %2684 = vmatprep.subr.mxu0 %v1516_v8 }
 0x403   :  { %2685 = vmatpush3.msra.mxu0 %v1500_v11 }
 0x404   :  { %2686 = vmatprep.subr.mxu0 %v1515_v16 }
 0x405   :  { %2687 = vmatpush3.msra.mxu0 %v1499_v20 }
 0x4be   :  { %v1156_v44 = vpop.f32.mrf.mxu0 }
 0x4bf   :  { %v1160_v9 = vmul.f32 0.001953125, %v1156_v44  ;;  %v1496_v44 = vld [vmem:[#allocation5 + $0x148] sm:$0xff] }
 0x4c0   :  { %v3005_v46 = vpop.f32.mrf.mxu0 }
 0x4c1   :  { %v1161_v48 = vadd.f32 1e-05, %v1160_v9  ;;  %v1464_v9 = vld [vmem:[#allocation5 + $0x48] sm:$0xff]  ;;  %v1511_v46 = vld [vmem:[#allocation5 + $0x1c0] sm:$0xff] }
 0x4c3   :  { %3371 = vrsqrt.f32 %v1161_v48  ;;  %v1479_v48 = vld [vmem:[#allocation5 + $0xc0] sm:$0xff] }
 0x4d0   :  { %v3372_v50 = vpop.eup %3371 }
 0x4d1   :  { %v1166_v19 = vrot.slane %v3372_v50, %v3975_v15  ;;  %v1495_v50 = vld [vmem:[#allocation5 + $0x140] sm:$0xff] }
 0x4d3   :  { %v1167_v51 = vmul.f32 %v1166_v19, %v1012_v26  ;;  %v1168_v54 = vmul.f32 %v1166_v19, %v1013_v25  ;;  %v1169_v55 = vmul.f32 %v1166_v19, %v1014_v24  ;;  %v1170_v12 = vmul.f32 %v1166_v19, %v1015_v22  ;;  %v1514_v22 = vld [vmem:[#allocation5 + $0x1d8] sm:$0xff]  ;;  %v1481_v26 = vld [vmem:[#allocation5 + $0xd0] sm:$0xff]  ;;  %v1463_v19 = vld [vmem:[#allocation5 + $0x40] sm:$0xff] }
 0x4d4   :  { %v1482_v24 = vld [vmem:[#allocation5 + $0xd8] sm:$0xff]  ;;  %2688 = vmatprep.subr.mxu0 %v1514_v22 }
 0x4d5   :  { %v1178_v58 = vmul.f32 %v2382_v35, %v1167_v51  ;;  %v1179_v57 = vmul.f32 %v2382_v35, %v1168_v54  ;;  %v1180_v59 = vmul.f32 %v2382_v35, %v1169_v55  ;;  %v1181_v60 = vmul.f32 %v2382_v35, %v1170_v12  ;;  %v1466_v25 = vld [vmem:[#allocation5 + $0x58] sm:$0xff]  ;;  %2644 = vmatprep.subr.mxu1 %v1482_v24  ;;  %v1509_v12 = vld [vmem:[#allocation5 + $0x1b0] sm:$0xff] }
 0x4d6   :  { %2689 = vmatpush3.msra.mxu0 %v1498_v2  ;;  %2645 = vmatpush3.msra.mxu1 %v1466_v25  ;;  %v1510_v35 = vld [vmem:[#allocation5 + $0x1b8] sm:$0xff] }
 0x4d7   :  { %v1189_v61 = vadd.f32 %v2383_v56, %v1178_v58  ;;  %v1190_v62 = vadd.f32 %v2383_v56, %v1179_v57  ;;  %v1191_v63 = vadd.f32 %v2383_v56, %v1180_v59  ;;  %v1192_v1 = vadd.f32 %v2383_v56, %v1181_v60  ;;  %2690 = vmatprep.subr.mxu0 %v1513_v52  ;;  %v1478_v51 = vld [vmem:[#allocation5 + $0xb8] sm:$0xff]  ;;  %v1477_v56 = vld [vmem:[#allocation5 + $0xb0] sm:$0xff]  ;;  %v1508_v59 = vld [vmem:[#allocation5 + $0x1a8] sm:$0xff] }
 0x4d8   :  { %2646 = vmatprep.subr.mxu1 %v1481_v26  ;;  %2691 = vmatpush3.msra.mxu0 %v1497_v39  ;;  %v1494_v54 = vld [vmem:[#allocation5 + $0x138] sm:$0xff]  ;;  %v1493_v58 = vld [vmem:[#allocation5 + $0x130] sm:$0xff]  ;;  %v1476_v60 = vld [vmem:[#allocation5 + $0xa8] sm:$0xff] }
 0x4d9   :  { %v1193_v3 = vmax.f32 %v1189_v61, 0.0  ;;  %v1194_v4 = vmax.f32 %v1190_v62, 0.0  ;;  %v1195_v7 = vmax.f32 %v1191_v63, 0.0  ;;  %v1196_v34 = vmax.f32 %v1192_v1, 0.0  ;;  %2647 = vmatpush3.msra.mxu1 %v1465_v0  ;;  %2692 = vmatprep.subr.mxu0 %v1512_v40  ;;  %v1462_v55 = vld [vmem:[#allocation5 + $0x38] sm:$0xff]  ;;  %v1461_v57 = vld [vmem:[#allocation5 + $0x30] sm:$0xff] }
 0x4da   :  { %2648 = vmatprep.subr.mxu1 %v1480_v41  ;;  %2693 = vmatpush3.msra.mxu0 %v1496_v44  ;;  %v1492_v61 = vld [vmem:[#allocation5 + $0x128] sm:$0xff]  ;;  %v1507_v63 = vld [vmem:[#allocation5 + $0x1a0] sm:$0xff] }
 0x4db   :  { %v1202_v37 = vrot.slane %v1193_v3, 7  ;;  %v1203_v33 = vrot.slane %v1194_v4, 7  ;;  %v1205_v36 = vrot.slane %v1195_v7, 7  ;;  %v1206_v49 = vrot.slane %v1196_v34, 7  ;;  %2649 = vmatpush3.msra.mxu1 %v1464_v9  ;;  %2694 = vmatprep.subr.mxu0 %v1511_v46  ;;  %v1460_v62 = vld [vmem:[#allocation5 + $0x28] sm:$0xff]  ;;  %v1475_v1 = vld [vmem:[#allocation5 + $0xa0] sm:$0xff] }
 0x4dc   :  { %2650 = vmatprep.subr.mxu1 %v1479_v48  ;;  %2695 = vmatpush3.msra.mxu0 %v1495_v50  ;;  %v1491_v3 = vld [vmem:[#allocation5 + $0x120] sm:$0xff]  ;;  %v1506_v7 = vld [vmem:[#allocation5 + $0x198] sm:$0xff] }
 0x4dd   :  { %v1212_v6 = vsel %vm1201_vm6, 0.0, %v1202_v37  ;;  %v1204_v13 = vsel %vm1201_vm6, %v1202_v37, %v1203_v33  ;;  %v1213_v28 = vsel %vm1201_vm6, 0.0, %v1205_v36  ;;  %v1207_v32 = vsel %vm1201_vm6, %v1205_v36, %v1206_v49  ;;  %2651 = vmatpush3.msra.mxu1 %v1463_v19  ;;  %2696 = vmatprep.subr.mxu0 %v1510_v35  ;;  %v1459_v4 = vld [vmem:[#allocation5 + $0x20] sm:$0xff]  ;;  %v1474_v34 = vld [vmem:[#allocation5 + $0x98] sm:$0xff]  ;;  %v1489_v36 = vld [vmem:[#allocation5 + $0x110] sm:$0xff] }
 0x4de   :  { %1220 = vrot.lane.b32.xlu0 %v1212_v6, %s3459_s9  ;;  %1222 = vrot.lane.b32.xlu1 %v1204_v13, %s3459_s9  ;;  %v1214_v53 = vsel %vm1201_vm6, %v1203_v33, 0.0  ;;  %v1215_v47 = vsel %vm1201_vm6, %v1206_v49, 0.0  ;;  %v1490_v37 = vld [vmem:[#allocation5 + $0x118] sm:$0xff]  ;;  %v1505_v6 = vld [vmem:[#allocation5 + $0x190] sm:$0xff] }
 0x4df   :  { %v3246_v30 = vpack.i.bf16 %v1215_v47, %v1214_v53  ;;  %2652 = vmatprep.subr.mxu1 %v1478_v51  ;;  %2697 = vmatpush3.msra.mxu0 %v1494_v54  ;;  %v1458_v33 = vld [vmem:[#allocation5 + $0x18] sm:$0xff]  ;;  %v1473_v13 = vld [vmem:[#allocation5 + $0x90] sm:$0xff]  ;;  %v1488_v53 = vld [vmem:[#allocation5 + $0x108] sm:$0xff] }
 0x4e0   :  { %2653 = vmatpush3.msra.mxu1 %v1462_v55  ;;  %2698 = vmatprep.subr.mxu0 %v1509_v12  ;;  %v1457_v49 = vld [vmem:[#allocation5 + $0x10] sm:$0xff]  ;;  %v1456_v47 = vld [vmem:[#allocation5 + $0x8] sm:$0xff] }
 0x4e1   :  { %2654 = vmatprep.subr.mxu1 %v1477_v56  ;;  %2699 = vmatpush3.msra.mxu0 %v1493_v58 }
 0x4e2   :  { %1226 = vrot.lane.b32.xlu0 %v1213_v28, %s3459_s9  ;;  %1228 = vrot.lane.b32.xlu1 %v1207_v32, %s3459_s9  ;;  %v1504_v28 = vld [vmem:[#allocation5 + $0x188] sm:$0xff] }
 0x4e3   :  { %2655 = vmatpush3.msra.mxu1 %v1461_v57  ;;  %2700 = vmatprep.subr.mxu0 %v1508_v59  ;;  %v1472_v32 = vld [vmem:[#allocation5 + $0x88] sm:$0xff] }
 0x4e4   :  { %2656 = vmatprep.subr.mxu1 %v1476_v60  ;;  %2701 = vmatpush3.msra.mxu0 %v1492_v61 }
 0x4e5   :  { %2657 = vmatpush3.msra.mxu1 %v1460_v62  ;;  %2702 = vmatprep.subr.mxu0 %v1507_v63 }
 0x4e6   :  { %3247 = vrot.lane.b32.xlu0 %v3246_v30, %s3459_s9  ;;  %2658 = vmatprep.subr.mxu1 %v1475_v1  ;;  %v1503_v30 = vld [vmem:[#allocation5 + $0x180] sm:$0xff] }
 0x4e7   :  { %2703 = vmatpush3.msra.mxu0 %v1491_v3  ;;  %2659 = vmatpush3.msra.mxu1 %v1459_v4 }
 0x4e8   :  { %2704 = vmatprep.subr.mxu0 %v1506_v7  ;;  %2660 = vmatprep.subr.mxu1 %v1474_v34 }
 0x4e9   :  { %2705 = vmatpush3.msra.mxu0 %v1490_v37  ;;  %2661 = vmatpush3.msra.mxu1 %v1458_v33 }
 0x4ea   :  { %2706 = vmatprep.subr.mxu0 %v1505_v6  ;;  %2662 = vmatprep.subr.mxu1 %v1473_v13 }
 0x4eb   :  { %2707 = vmatpush3.msra.mxu0 %v1489_v36  ;;  %2663 = vmatpush3.msra.mxu1 %v1457_v49 }
 0x4ec   :  { %2708 = vmatprep.subr.mxu0 %v1504_v28  ;;  %2664 = vmatprep.subr.mxu1 %v1472_v32 }
 0x4ed   :  { %2709 = vmatpush3.msra.mxu0 %v1488_v53  ;;  %2665 = vmatpush3.msra.mxu1 %v1456_v47 }
 0x4ee   :  { %2710 = vmatprep.subr.mxu0 %v1503_v30  ;;  %2666 = vmatprep.subr.mxu1 %v1471_v31 }
 0x4ef   :  { %2711 = vmatpush3.msra.mxu0 %v1487_v38  ;;  %2667 = vmatpush3.msra.mxu1 %v1455_v27 }
 0x4f0   :  { %2768 = vmatprep.subr.mxu0 %v1582_v5  ;;  %2724 = vmatprep.subr.mxu1 %v1550_v23 }
 0x550   :  { %v3996_v29 = vpop.permute.xlu0 %1220  ;;  %v3998_v42 = vpop.permute.xlu1 %1222 }
 0x551   :  { %v1239_v43 = vsel %vm1238_vm7, 0.0, %v3996_v29  ;;  %v1245_v8 = vsel %vm1238_vm7, %v3996_v29, 0.0  ;;  %v1240_v10 = vsel %vm1238_vm7, 0.0, %v3998_v42  ;;  %v1246_v11 = vsel %vm1238_vm7, %v3998_v42, 0.0 }
 0x552   :  { %v3256_v14 = vpack.i.bf16 %v1245_v8, %v1239_v43  ;;  %v1309_v17 = vrot.slane %v1239_v43, 1  ;;  %v1310_v20 = vrot.slane %v1240_v10, 1  ;;  %v1325_v21 = vrot.slane %v1245_v8, 1 }
 0x553   :  { %v1326_v22 = vrot.slane %v1246_v11, 1  ;;  %v3261_v52 = vpack.i.bf16 %v1246_v11, %v1240_v10  ;;  %v1383_v35 = vrot.slane %v1239_v43, 2  ;;  %v1397_v51 = vrot.slane %v1245_v8, 2 }
 0x554   :  { %v4008_v16 = vpop.permute.xlu0 %1226  ;;  %3257 = vrot.lane.b32.xlu0 %v3256_v14, %s3462_s12  ;;  %3252 = vrot.lane.b32.xlu1 %v3256_v14, %s3461_s27  ;;  %v4020_v25 = vpop.permute.xlu1 %1228  ;;  %v1311_v0 = vsel %vm146_vm0, %v1309_v17, %v1310_v20  ;;  %v1384_v54 = vrot.slane %v1240_v10, 2  ;;  %v1398_v55 = vrot.slane %v1246_v11, 2 }
 0x555   :  { %v4013_v24 = vsel %vm1238_vm7, 0.0, %v4008_v16  ;;  %v4017_v2 = vsel %vm1238_vm7, %v4008_v16, 0.0  ;;  %v4024_v26 = vsel %vm1238_vm7, 0.0, %v4020_v25  ;;  %v4028_v39 = vsel %vm1238_vm7, %v4020_v25, 0.0  ;;  %1748 = vmatprep.mubr.f32.mxu0 %v1311_v0 }
 0x556   :  { %v3266_v40 = vpack.i.bf16 %v4017_v2, %v4013_v24  ;;  %v1327_v44 = vsel %vm146_vm0, %v1325_v21, %v1326_v22  ;;  %v3271_v46 = vpack.i.bf16 %v4028_v39, %v4024_v26  ;;  %v4045_v58 = vsel %vm221_vm1, %v1383_v35, %v1384_v54  ;;  %v1549_v35 = vld [vmem:[#allocation5 + $0x2f0] sm:$0xff] }
 0x557   :  { %v3276_v48 = vpack.i.bf16 %v1327_v44, %v1311_v0  ;;  %v1399_v57 = vsel %vm221_vm1, %v1397_v51, %v1398_v55  ;;  %v1314_v1 = vrot.slane %v4013_v24, 1  ;;  %v1330_v4 = vrot.slane %v4017_v2, 1  ;;  %v1526_v44 = vld [vmem:[#allocation5 + $0x238] sm:$0xff] }
 0x558   :  { %v3248_v41 = vpop.permute.xlu0 %3247  ;;  %3262 = vrot.lane.b32.xlu1 %v3261_v52, %s3461_s27  ;;  %3267 = vrot.lane.b32.xlu0 %v3266_v40, %s3461_s27  ;;  %v3301_v3 = vpack.i.bf16 %v1399_v57, %v4045_v58  ;;  %v1315_v7 = vrot.slane %v4024_v26, 1  ;;  %v1331_v34 = vrot.slane %v4028_v39, 1  ;;  %v1388_v49 = vrot.slane %v4013_v24, 2  ;;  %v1580_v57 = vld [vmem:[#allocation5 + $0x3e8] sm:$0xff] }
 0x559   :  { %v3249_v9 = vunpack.i.l.bf16 %v3248_v41  ;;  %v3250_v63 = vunpack.i.h.bf16 %v3248_v41  ;;  %v1402_v28 = vrot.slane %v4017_v2, 2  ;;  %v1389_v32 = vrot.slane %v4024_v26, 2  ;;  %v1566_v41 = vld [vmem:[#allocation5 + $0x378] sm:$0xff] }
 0x55a   :  { %v1403_v53 = vrot.slane %v4028_v39, 2  ;;  %v4074_v30 = vsel %vm146_vm0, %v1314_v1, %v1315_v7  ;;  %v1332_v31 = vsel %vm146_vm0, %v1330_v4, %v1331_v34  ;;  %v1548_v1 = vld [vmem:[#allocation5 + $0x2e8] sm:$0xff]  ;;  %v1579_v4 = vld [vmem:[#allocation5 + $0x3e0] sm:$0xff] }
 0x55b   :  { %v1241_v50 = vsel %vm1238_vm7, 0.0, %v3249_v9  ;;  %v1247_v19 = vsel %vm1238_vm7, %v3249_v9, 0.0  ;;  %v1244_v13 = vsel %vm1238_vm7, 0.0, %v3250_v63  ;;  %v1250_v36 = vsel %vm1238_vm7, %v3250_v63, 0.0 }
 0x55c   :  { %3272 = vrot.lane.b32.xlu1 %v3271_v46, %s3461_s27  ;;  %3277 = vrot.lane.b32.xlu0 %v3276_v48, %s3462_s12  ;;  %v1312_v12 = vrot.slane %v1241_v50, 1  ;;  %v1328_v56 = vrot.slane %v1247_v19, 1  ;;  %v1386_v59 = vrot.slane %v1241_v50, 2  ;;  %v1400_v60 = vrot.slane %v1247_v19, 2  ;;  %v1581_v19 = vld [vmem:[#allocation5 + $0x3f0] sm:$0xff] }
 0x55d   :  { %v1317_v38 = vrot.slane %v1244_v13, 1  ;;  %v1333_v27 = vrot.slane %v1250_v36, 1  ;;  %v3321_v5 = vpack.i.bf16 %v1332_v31, %v4074_v30  ;;  %v4081_v23 = vsel %vm221_vm1, %v1388_v49, %v1389_v32  ;;  %v1577_v31 = vld [vmem:[#allocation5 + $0x3d0] sm:$0xff] }
 0x55e   :  { %v4050_v61 = vsel %vm146_vm0, %v1310_v20, %v1312_v12  ;;  %v1329_v62 = vsel %vm146_vm0, %v1326_v22, %v1328_v56  ;;  %v4062_v33 = vsel %vm221_vm1, %v1384_v54, %v1386_v59  ;;  %v1401_v6 = vsel %vm221_vm1, %v1398_v55, %v1400_v60  ;;  %v1565_v12 = vld [vmem:[#allocation5 + $0x370] sm:$0xff] }
 0x55f   :  { %v3306_v37 = vpack.i.bf16 %v1329_v62, %v4050_v61  ;;  %v3316_v47 = vpack.i.bf16 %v1401_v6, %v4062_v33  ;;  %v1404_v43 = vsel %vm221_vm1, %v1402_v28, %v1403_v53  ;;  %v1391_v8 = vrot.slane %v1244_v13, 2  ;;  %v1533_v56 = vld [vmem:[#allocation5 + $0x270] sm:$0xff]  ;;  %v1564_v62 = vld [vmem:[#allocation5 + $0x368] sm:$0xff]  ;;  %v1531_v6 = vld [vmem:[#allocation5 + $0x260] sm:$0xff] }
 0x560   :  { %3282 = vrot.lane.b32.xlu1 %v3276_v48, %s3461_s27  ;;  %3287 = vrot.lane.b32.xlu0 %v3261_v52, %s3462_s12  ;;  %v1405_v10 = vrot.slane %v1250_v36, 2  ;;  %v4086_v11 = vsel %vm146_vm0, %v1315_v7, %v1317_v38  ;;  %v1334_v14 = vsel %vm146_vm0, %v1331_v34, %v1333_v27  ;;  %v3331_v17 = vpack.i.bf16 %v1404_v43, %v4081_v23  ;;  %v1534_v48 = vld [vmem:[#allocation5 + $0x278] sm:$0xff]  ;;  %v1532_v7 = vld [vmem:[#allocation5 + $0x268] sm:$0xff]  ;;  %v1563_v34 = vld [vmem:[#allocation5 + $0x360] sm:$0xff] }
 0x561   :  { %v3336_v20 = vpack.i.bf16 %v1334_v14, %v4086_v11  ;;  %v4094_v21 = vsel %vm221_vm1, %v1389_v32, %v1391_v8  ;;  %v1578_v13 = vld [vmem:[#allocation5 + $0x3d8] sm:$0xff]  ;;  %v1561_v43 = vld [vmem:[#allocation5 + $0x350] sm:$0xff]  ;;  %v1576_v14 = vld [vmem:[#allocation5 + $0x3c8] sm:$0xff] }
 0x562   :  { %v1406_v22 = vsel %vm221_vm1, %v1403_v53, %v1405_v10  ;;  %v1562_v28 = vld [vmem:[#allocation5 + $0x358] sm:$0xff]  ;;  %v1529_v10 = vld [vmem:[#allocation5 + $0x250] sm:$0xff] }
 0x563   :  { %v3346_v24 = vpack.i.bf16 %v1406_v22, %v4094_v21  ;;  %v1546_v53 = vld [vmem:[#allocation5 + $0x2d8] sm:$0xff] }
 0x564   :  { %3292 = vrot.lane.b32.xlu1 %v3266_v40, %s3462_s12  ;;  %3297 = vrot.lane.b32.xlu0 %v3271_v46, %s3462_s12  ;;  %v1530_v27 = vld [vmem:[#allocation5 + $0x258] sm:$0xff] }
 0x568   :  { %3302 = vrot.lane.b32.xlu1 %v3301_v3, %s3461_s27  ;;  %3307 = vrot.lane.b32.xlu0 %v3306_v37, %s3462_s12 }
 0x56c   :  { %3312 = vrot.lane.b32.xlu1 %v3306_v37, %s3461_s27  ;;  %3317 = vrot.lane.b32.xlu0 %v3316_v47, %s3461_s27 }
 0x570   :  { %3322 = vrot.lane.b32.xlu1 %v3321_v5, %s3462_s12  ;;  %3327 = vrot.lane.b32.xlu0 %v3321_v5, %s3461_s27  ;;  %v1545_v5 = vld [vmem:[#allocation5 + $0x2d0] sm:$0xff] }
 0x574   :  { %3332 = vrot.lane.b32.xlu1 %v3331_v17, %s3461_s27  ;;  %3337 = vrot.lane.b32.xlu0 %v3336_v20, %s3462_s12 }
 0x578   :  { %3342 = vrot.lane.b32.xlu1 %v3336_v20, %s3461_s27  ;;  %3347 = vrot.lane.b32.xlu0 %v3346_v24, %s3461_s27 }
 0x57c   :  { %3352 = vrot.lane.b32.xlu1 %v3301_v3, %s3462_s12  ;;  %3357 = vrot.lane.b32.xlu0 %v3316_v47, %s3462_s12 }
 0x580   :  { %3362 = vrot.lane.b32.xlu1 %v3331_v17, %s3462_s12  ;;  %3367 = vrot.lane.b32.xlu0 %v3346_v24, %s3462_s12  ;;  %v1544_v24 = vld [vmem:[#allocation5 + $0x2c8] sm:$0xff] }
 0x5c6   :  { %v3258_v2 = vpop.permute.xlu0 %3257  ;;  %v3253_v52 = vpop.permute.xlu1 %3252 }
 0x5c7   :  { %v3260_v26 = vunpack.i.h.bf16 %v3258_v2  ;;  %v3259_v39 = vunpack.i.l.bf16 %v3258_v2  ;;  %v3255_v0 = vunpack.i.h.bf16 %v3253_v52  ;;  %v3254_v40 = vunpack.i.l.bf16 %v3253_v52  ;;  %v1560_v2 = vld [vmem:[#allocation5 + $0x348] sm:$0xff] }
 0x5c9   :  { %v1299_v9 = vsel %vm135_vm3, %v3259_v39, %v3260_v26  ;;  %v1275_v46 = vsel %vm110_vm2, %v3254_v40, %v3255_v0  ;;  %v1528_v26 = vld [vmem:[#allocation5 + $0x248] sm:$0xff]  ;;  %v1575_v40 = vld [vmem:[#allocation5 + $0x3c0] sm:$0xff] }
 0x5ca   :  { %1749 = vmatmul.mubr.f32.vlgmr.msra.gmra.mxu0 %v1299_v9  ;;  %v3263_v50 = vpop.permute.xlu1 %3262  ;;  %1663 = vmatprep.mubr.f32.mxu1 %v1275_v46  ;;  %v3268_v51 = vpop.permute.xlu0 %3267  ;;  %v1559_v46 = vld [vmem:[#allocation5 + $0x340] sm:$0xff] }
 0x5cb   :  { %2769 = vmatpush3.msra.mxu0 %v1566_v41  ;;  %v3265_v54 = vunpack.i.h.bf16 %v3263_v50  ;;  %v3264_v55 = vunpack.i.l.bf16 %v3263_v50  ;;  %2385 = vmatmul.mubr.msk.f32.vlgmr.msra.gmra.mxu1 %vm4106_vm8, %v3996_v29  ;;  %v3270_v59 = vunpack.i.h.bf16 %v3268_v51  ;;  %v3269_v60 = vunpack.i.l.bf16 %v3268_v51  ;;  %v1543_v41 = vld [vmem:[#allocation5 + $0x2c0] sm:$0xff]  ;;  %v1558_v51 = vld [vmem:[#allocation5 + $0x338] sm:$0xff] }
 0x5cc   :  { %1753 = vmatprep.mubr.f32.mxu0 %v4050_v61  ;;  %2725 = vmatpush3.msra.mxu1 %v1534_v48  ;;  %v1547_v61 = vld [vmem:[#allocation5 + $0x2e0] sm:$0xff] }
 0x5cd   :  { %2770 = vmatprep.subr.mxu0 %v1581_v19  ;;  %2726 = vmatprep.subr.mxu1 %v1549_v35  ;;  %v1276_v63 = vsel %vm110_vm2, %v3264_v55, %v3265_v54  ;;  %v1277_v37 = vsel %vm110_vm2, %v3269_v60, %v3270_v59  ;;  %v1527_v50 = vld [vmem:[#allocation5 + $0x240] sm:$0xff]  ;;  %v1574_v19 = vld [vmem:[#allocation5 + $0x3b8] sm:$0xff] }
 0x5ce   :  { %2771 = vmatpush3.msra.mxu0 %v1565_v12  ;;  %2727 = vmatpush3.msra.mxu1 %v1533_v56  ;;  %v3273_v3 = vpop.permute.xlu1 %3272  ;;  %v4117_v29 = vpop.permute.xlu0 %3277  ;;  %v1542_v54 = vld [vmem:[#allocation5 + $0x2b8] sm:$0xff]  ;;  %v1541_v56 = vld [vmem:[#allocation5 + $0x2b0] sm:$0xff] }
 0x5cf   :  { %2772 = vmatprep.subr.mxu0 %v1580_v57  ;;  %1668 = vmatprep.mubr.f32.mxu1 %v1276_v63  ;;  %v3275_v36 = vunpack.i.h.bf16 %v3273_v3  ;;  %v3274_v49 = vunpack.i.l.bf16 %v3273_v3  ;;  %v3280_v52 = vunpack.i.h.bf16 %v4117_v29  ;;  %v1557_v57 = vld [vmem:[#allocation5 + $0x330] sm:$0xff]  ;;  %v1572_v3 = vld [vmem:[#allocation5 + $0x3a8] sm:$0xff] }
 0x5d0   :  { %2773 = vmatpush3.msra.mxu0 %v1564_v62  ;;  %2728 = vmatprep.subr.mxu1 %v1548_v1  ;;  %v1525_v1 = vld [vmem:[#allocation5 + $0x230] sm:$0xff] }
 0x5d1   :  { %2387 = vmatmul.mubr.msk.f32.gmra.mxu1 %vm4106_vm8, %v3998_v42  ;;  %2774 = vmatprep.subr.mxu0 %v1579_v4  ;;  %v1278_v8 = vsel %vm110_vm2, %v3274_v49, %v3275_v36  ;;  %v1556_v4 = vld [vmem:[#allocation5 + $0x328] sm:$0xff]  ;;  %v1570_v36 = vld [vmem:[#allocation5 + $0x398] sm:$0xff] }
 0x5d2   :  { %2729 = vmatpush3.msra.mxu1 %v1532_v7  ;;  %1673 = vmatprep.mubr.f32.mxu1 %v1277_v37  ;;  %v4123_v32 = vpop.permute.xlu1 %3282  ;;  %v3288_v47 = vpop.permute.xlu0 %3287  ;;  %v1524_v7 = vld [vmem:[#allocation5 + $0x228] sm:$0xff] }
 0x5d3   :  { %2730 = vmatprep.subr.mxu1 %v1547_v61  ;;  %2775 = vmatpush3.msra.mxu0 %v1563_v34  ;;  %v3290_v42 = vunpack.i.h.bf16 %v3288_v47  ;;  %v3289_v38 = vunpack.i.l.bf16 %v3288_v47  ;;  %v1571_v61 = vld [vmem:[#allocation5 + $0x3a0] sm:$0xff]  ;;  %v1538_v47 = vld [vmem:[#allocation5 + $0x298] sm:$0xff] }
 0x5d4   :  { %2731 = vmatpush3.msra.mxu1 %v1531_v6  ;;  %2776 = vmatprep.subr.mxu0 %v1578_v13  ;;  %v1539_v6 = vld [vmem:[#allocation5 + $0x2a0] sm:$0xff] }
 0x5d5   :  { %2777 = vmatpush3.msra.mxu0 %v1562_v28  ;;  %2732 = vmatprep.subr.mxu1 %v1546_v53  ;;  %v1300_v20 = vsel %vm135_vm3, %v3289_v38, %v3290_v42  ;;  %v1555_v13 = vld [vmem:[#allocation5 + $0x320] sm:$0xff]  ;;  %v1554_v53 = vld [vmem:[#allocation5 + $0x318] sm:$0xff]  ;;  %v1569_v42 = vld [vmem:[#allocation5 + $0x390] sm:$0xff] }
 0x5d6   :  { %2389 = vmatmul.mubr.msk.f32.gmra.mxu1 %vm4106_vm8, %v4008_v16  ;;  %2778 = vmatprep.subr.mxu0 %v1577_v31  ;;  %v3293_v17 = vpop.permute.xlu1 %3292  ;;  %v4130_v22 = vpop.permute.xlu0 %3297  ;;  %v3279_v16 = vunpack.i.l.bf16 %v4117_v29  ;;  %v1540_v29 = vld [vmem:[#allocation5 + $0x2a8] sm:$0xff]  ;;  %v1522_v31 = vld [vmem:[#allocation5 + $0x218] sm:$0xff]  ;;  %v1537_v38 = vld [vmem:[#allocation5 + $0x290] sm:$0xff] }
 0x5d7   :  { %2733 = vmatpush3.msra.mxu1 %v1530_v27  ;;  %1678 = vmatprep.mubr.f32.mxu1 %v1278_v8  ;;  %v3295_v39 = vunpack.i.h.bf16 %v3293_v17  ;;  %v3294_v0 = vunpack.i.l.bf16 %v3293_v17  ;;  %v3300_v62 = vunpack.i.h.bf16 %v4130_v22  ;;  %v3299_v63 = vunpack.i.l.bf16 %v4130_v22  ;;  %v1553_v27 = vld [vmem:[#allocation5 + $0x310] sm:$0xff]  ;;  %v1552_v8 = vld [vmem:[#allocation5 + $0x308] sm:$0xff]  ;;  %v1567_v22 = vld [vmem:[#allocation5 + $0x380] sm:$0xff] }
 0x5d8   :  { %2734 = vmatprep.subr.mxu1 %v1545_v5  ;;  %2779 = vmatpush3.msra.mxu0 %v1561_v43  ;;  %v1375_v35 = vsel %vm135_vm3, %v3279_v16, %v3280_v52  ;;  %v1521_v5 = vld [vmem:[#allocation5 + $0x210] sm:$0xff]  ;;  %v1568_v43 = vld [vmem:[#allocation5 + $0x388] sm:$0xff] }
 0x5d9   :  { %2735 = vmatpush3.msra.mxu1 %v1529_v10  ;;  %2780 = vmatprep.subr.mxu0 %v1576_v14  ;;  %v1301_v55 = vsel %vm135_vm3, %v3294_v0, %v3295_v39  ;;  %v1302_v37 = vsel %vm135_vm3, %v3299_v63, %v3300_v62  ;;  %v1536_v10 = vld [vmem:[#allocation5 + $0x288] sm:$0xff]  ;;  %v1551_v39 = vld [vmem:[#allocation5 + $0x300] sm:$0xff] }
 0x5da   :  { %1754 = vmatmul.mubr.f32.gmra.mxu0 %v1300_v20  ;;  %2736 = vmatprep.subr.mxu1 %v1544_v24  ;;  %v3303_v9 = vpop.permute.xlu1 %3302  ;;  %v4137_v48 = vpop.permute.xlu0 %3307  ;;  %v1520_v20 = vld [vmem:[#allocation5 + $0x208] sm:$0xff]  ;;  %v3285_v24 = vunpack.i.h.bf16 %v4123_v32  ;;  %v1595_v63 = vld [vmem:[#allocation5 + $0x460] sm:$0xff] }
 0x5db   :  { %2781 = vmatpush3.msra.mxu0 %v1560_v2  ;;  %2391 = vmatmul.mubr.msk.f32.gmra.mxu1 %vm4106_vm8, %v4020_v25  ;;  %v1573_v25 = vld [vmem:[#allocation5 + $0x3b0] sm:$0xff]  ;;  %v3305_v12 = vunpack.i.h.bf16 %v3303_v9  ;;  %v3284_v2 = vunpack.i.l.bf16 %v4123_v32  ;;  %v3310_v0 = vunpack.i.h.bf16 %v4137_v48  ;;  %v1598_v32 = vld [vmem:[#allocation5 + $0x478] sm:$0xff] }
 0x5dc   :  { %1758 = vmatprep.mubr.f32.mxu0 %v4074_v30  ;;  %2737 = vmatpush3.msra.mxu1 %v1528_v26  ;;  %v3304_v30 = vunpack.i.l.bf16 %v3303_v9  ;;  %v1535_v26 = vld [vmem:[#allocation5 + $0x280] sm:$0xff] }
 0x5dd   :  { %2782 = vmatprep.subr.mxu0 %v1575_v40  ;;  %2738 = vmatprep.subr.mxu1 %v1543_v41  ;;  %v3309_v40 = vunpack.i.l.bf16 %v4137_v48  ;;  %v1519_v41 = vld [vmem:[#allocation5 + $0x200] sm:$0xff] }
 0x5de   :  { %1833 = vmatprep.mubr.f32.mxu1 %v1375_v35  ;;  %2783 = vmatpush3.msra.mxu0 %v1559_v46  ;;  %v4142_v59 = vpop.permute.xlu0 %3317  ;;  %v4144_v60 = vpop.permute.xlu1 %3312  ;;  %v1423_v34 = vsel %vm110_vm2, %v3304_v30, %v3305_v12 }
 0x5df   :  { %2739 = vmatpush3.msra.mxu1 %v1527_v50  ;;  %2784 = vmatprep.subr.mxu0 %v1574_v19  ;;  %v3320_v52 = vunpack.i.h.bf16 %v4142_v59  ;;  %v3319_v16 = vunpack.i.l.bf16 %v4142_v59  ;;  %v1351_v50 = vsel %vm110_vm2, %v3284_v2, %v3285_v24  ;;  %v3315_v35 = vunpack.i.h.bf16 %v4144_v60 }
 0x5e0   :  { %2785 = vmatpush3.msra.mxu0 %v1558_v51  ;;  %2740 = vmatprep.subr.mxu1 %v1542_v54  ;;  %v3314_v48 = vunpack.i.l.bf16 %v4144_v60 }
 0x5e1   :  { %1759 = vmatmul.mubr.f32.gmra.mxu0 %v1301_v55  ;;  %2741 = vmatpush3.msra.mxu1 %v1526_v44  ;;  %v1424_v19 = vsel %vm110_vm2, %v3319_v16, %v3320_v52  ;;  %v1376_v55 = vsel %vm135_vm3, %v3309_v40, %v3310_v0  ;;  %v1597_v44 = vld [vmem:[#allocation5 + $0x470] sm:$0xff] }
 0x5e2   :  { %1763 = vmatprep.mubr.f32.mxu0 %v4086_v11  ;;  %2786 = vmatprep.subr.mxu0 %v1573_v25  ;;  %v1523_v11 = vld [vmem:[#allocation5 + $0x220] sm:$0xff]  ;;  %v4151_v49 = vpop.permute.xlu0 %3327  ;;  %v4153_v28 = vpop.permute.xlu1 %3322  ;;  %v1352_v62 = vsel %vm110_vm2, %v3314_v48, %v3315_v35  ;;  %v4203_v40 = vld [vmem:[%s4383_s7 + $0x70] sm:$0xff]  ;;  %v4254_v35 = vld [vmem:[%s4383_s7 + $0x38] sm:$0xff] }
 0x5e3   :  { %2742 = vmatprep.subr.mxu1 %v1541_v56  ;;  %2787 = vmatpush3.msra.mxu0 %v1557_v57  ;;  %v3325_v25 = vunpack.i.h.bf16 %v4153_v28  ;;  %v3324_v12 = vunpack.i.l.bf16 %v4153_v28  ;;  %v3330_v59 = vunpack.i.h.bf16 %v4151_v49  ;;  %v3329_v60 = vunpack.i.l.bf16 %v4151_v49  ;;  %v1592_v49 = vld [vmem:[#allocation5 + $0x448] sm:$0xff]  ;;  %v1591_v28 = vld [vmem:[#allocation5 + $0x440] sm:$0xff]  ;;  %v4261_v48 = vld [vmem:[%s4383_s7 + $0x30] sm:$0xff] }
 0x5e4   :  { %2743 = vmatpush3.msra.mxu1 %v1525_v1  ;;  %2788 = vmatprep.subr.mxu0 %v1572_v3 }
 0x5e5   :  { %2789 = vmatpush3.msra.mxu0 %v1556_v4  ;;  %2744 = vmatprep.subr.mxu1 %v1540_v29  ;;  %v1377_v4 = vsel %vm135_vm3, %v3324_v12, %v3325_v25  ;;  %v1594_v29 = vld [vmem:[#allocation5 + $0x458] sm:$0xff]  ;;  %v4296_v25 = vld [vmem:[%s4383_s7 + $0x8] sm:$0xff]  ;;  %v4303_v12 = vld [vmem:[%s4383_s7] sm:$0xff] }
 0x5e6   :  { %1764 = vmatmul.mubr.f32.gmra.mxu0 %v1302_v37  ;;  %2745 = vmatpush3.msra.mxu1 %v1524_v7  ;;  %v4155_v14 = vpop.permute.xlu0 %3337  ;;  %v3333_v17 = vpop.permute.xlu1 %3332  ;;  %v1353_v37 = vsel %vm110_vm2, %v3329_v60, %v3330_v59  ;;  %4412 = vst [vmem:[#allocation17_spill] sm:$0xff] %v4296_v25  ;;  %4413 = vst [vmem:[#allocation18_spill] sm:$0xff] %v4303_v12 }
 0x5e7   :  { %2790 = vmatprep.subr.mxu0 %v1571_v61  ;;  %1918 = vmatprep.mubr.f32.mxu0 %v1423_v34  ;;  %v3335_v9 = vunpack.i.h.bf16 %v3333_v17  ;;  %v3334_v46 = vunpack.i.l.bf16 %v3333_v17  ;;  %v3340_v1 = vunpack.i.h.bf16 %v4155_v14  ;;  %v3339_v3 = vunpack.i.l.bf16 %v4155_v14  ;;  %v1583_v17 = vld [vmem:[#allocation5 + $0x400] sm:$0xff] }
 0x5e8   :  { %2746 = vmatprep.subr.mxu1 %v1539_v6  ;;  %2791 = vmatpush3.msra.mxu0 %v1555_v13  ;;  %v1593_v6 = vld [vmem:[#allocation5 + $0x450] sm:$0xff] }
 0x5e9   :  { %2747 = vmatpush3.msra.mxu1 %v1523_v11  ;;  %2792 = vmatprep.subr.mxu0 %v1570_v36  ;;  %v1425_v57 = vsel %vm110_vm2, %v3334_v46, %v3335_v9  ;;  %v1378_v36 = vsel %vm135_vm3, %v3339_v3, %v3340_v1  ;;  %v4226_v9 = vld [vmem:[%s4383_s7 + $0x58] sm:$0xff]  ;;  %v4233_v46 = vld [vmem:[%s4383_s7 + $0x50] sm:$0xff] }
 0x5ea   :  { %2793 = vmatpush3.msra.mxu0 %v1554_v53  ;;  %2748 = vmatprep.subr.mxu1 %v1538_v47  ;;  %v3348_v51 = vpop.permute.xlu0 %3347  ;;  %v3343_v54 = vpop.permute.xlu1 %3342  ;;  %v1590_v47 = vld [vmem:[#allocation5 + $0x438] sm:$0xff] }
 0x5eb   :  { %2749 = vmatpush3.msra.mxu1 %v1522_v31  ;;  %2794 = vmatprep.subr.mxu0 %v1569_v42  ;;  %v3350_v30 = vunpack.i.h.bf16 %v3348_v51  ;;  %v3349_v56 = vunpack.i.l.bf16 %v3348_v51  ;;  %v3345_v61 = vunpack.i.h.bf16 %v3343_v54  ;;  %v3344_v34 = vunpack.i.l.bf16 %v3343_v54  ;;  %v1589_v31 = vld [vmem:[#allocation5 + $0x430] sm:$0xff]  ;;  %v1587_v42 = vld [vmem:[#allocation5 + $0x420] sm:$0xff]  ;;  %v4268_v51 = vld [vmem:[%s4383_s7 + $0x28] sm:$0xff] }
 0x5ec   :  { %2750 = vmatprep.subr.mxu1 %v1537_v38  ;;  %2795 = vmatpush3.msra.mxu0 %v1553_v27  ;;  %v1586_v38 = vld [vmem:[#allocation5 + $0x418] sm:$0xff]  ;;  %v4275_v54 = vld [vmem:[%s4383_s7 + $0x20] sm:$0xff] }
 0x5ed   :  { %2751 = vmatpush3.msra.mxu1 %v1521_v5  ;;  %2796 = vmatprep.subr.mxu0 %v1568_v43  ;;  %v1426_v7 = vsel %vm110_vm2, %v3349_v56, %v3350_v30  ;;  %v1585_v5 = vld [vmem:[#allocation5 + $0x410] sm:$0xff] }
 0x5ee   :  { %2797 = vmatpush3.msra.mxu0 %v1552_v8  ;;  %2752 = vmatprep.subr.mxu1 %v1536_v10  ;;  %v3358_v27 = vpop.permute.xlu0 %3357  ;;  %v1584_v8 = vld [vmem:[#allocation5 + $0x408] sm:$0xff] }
 0x5ef   :  { %2753 = vmatpush3.msra.mxu1 %v1520_v20  ;;  %2798 = vmatprep.subr.mxu0 %v1567_v22  ;;  %v3360_v10 = vunpack.i.h.bf16 %v3358_v27  ;;  %v3359_v14 = vunpack.i.l.bf16 %v3358_v27 }
 0x5f0   :  { %2754 = vmatprep.subr.mxu1 %v1535_v26  ;;  %2799 = vmatpush3.msra.mxu0 %v1551_v39  ;;  %v4195_v39 = vld [vmem:[%s4383_s7 + $0x78] sm:$0xff] }
 0x5f1   :  { %2755 = vmatpush3.msra.mxu1 %v1519_v41  ;;  %1919 = vmatmul.mubr.f32.vlgmr.msra.gmra.mxu0 %v4045_v58  ;;  %v1596_v58 = vld [vmem:[#allocation5 + $0x468] sm:$0xff]  ;;  %v1448_v16 = vsel %vm135_vm3, %v3359_v14, %v3360_v10 }
 0x5f2   :  { %1834 = vmatmul.mubr.f32.vlgmr.msra.gmra.mxu1 %v1351_v50  ;;  %1923 = vmatprep.mubr.f32.mxu0 %v1424_v19  ;;  %v3368_v20 = vpop.permute.xlu0 %3367  ;;  %v4210_v41 = vld [vmem:[%s4383_s7 + $0x68] sm:$0xff]  ;;  %v4247_v19 = vld [vmem:[%s4383_s7 + $0x40] sm:$0xff] }
 0x5f3   :  { %3006 = vmatprep.subr.mxu1 %v1598_v32  ;;  %1838 = vmatprep.mubr.f32.mxu1 %v1376_v55  ;;  %v3370_v2 = vunpack.i.h.bf16 %v3368_v20  ;;  %v3369_v52 = vunpack.i.l.bf16 %v3368_v20  ;;  %v4240_v50 = vld [vmem:[%s4383_s7 + $0x48] sm:$0xff]  ;;  %v4282_v55 = vld [vmem:[%s4383_s7 + $0x18] sm:$0xff] }
 0x5f4   :  { %3007 = vmatpush3.msra.mxu1 %v1598_v32  ;;  %3044 = vmatprep.subr.mxu0 %v4405_v18  ;;  %v4219_v32 = vld [vmem:[%s4383_s7 + $0x60] sm:$0xff]  ;;  %4410 = vst [vmem:[#allocation15_spill] sm:$0xff] %v4282_v55 }
 0x5f5   :  { %3008 = vmatprep.subr.mxu1 %v1597_v44  ;;  %1924 = vmatmul.mubr.f32.gmra.mxu0 %v4062_v33  ;;  %v3353_v33 = vpop.permute.xlu1 %3352  ;;  %v1450_v0 = vsel %vm135_vm3, %v3369_v52, %v3370_v2 }
 0x5f6   :  { %3009 = vmatpush3.msra.mxu1 %v1597_v44  ;;  %1928 = vmatprep.mubr.f32.mxu0 %v1425_v57  ;;  %v3355_v13 = vunpack.i.h.bf16 %v3353_v33  ;;  %v3354_v11 = vunpack.i.l.bf16 %v3353_v33  ;;  %v4289_v44 = vld [vmem:[%s4383_s7 + $0x10] sm:$0xff] }
 0x5f7   :  { %1839 = vmatmul.mubr.f32.gmra.mxu1 %v1352_v62  ;;  %3010 = vmatprep.subr.mxu1 %v1596_v58  ;;  %4411 = vst [vmem:[#allocation16_spill] sm:$0xff] %v4289_v44 }
 0x5f8   :  { %1843 = vmatprep.mubr.f32.mxu1 %v1377_v4  ;;  %3011 = vmatpush3.msra.mxu1 %v1596_v58  ;;  %v1447_v53 = vsel %vm135_vm3, %v3354_v11, %v3355_v13 }
 0x5f9   :  { %3012 = vmatprep.subr.mxu1 %v1595_v63  ;;  %1929 = vmatmul.mubr.f32.gmra.mxu0 %v4081_v23  ;;  %v1354_v23 = vsel %vm110_vm2, %v3344_v34, %v3345_v61  ;;  %v3363_v43 = vpop.permute.xlu1 %3362 }
 0x5fa   :  { %3013 = vmatpush3.msra.mxu1 %v1595_v63  ;;  %1933 = vmatprep.mubr.f32.mxu0 %v1426_v7  ;;  %v3365_v22 = vunpack.i.h.bf16 %v3363_v43  ;;  %v3364_v24 = vunpack.i.l.bf16 %v3363_v43 }
 0x5fb   :  { %1844 = vmatmul.mubr.f32.gmra.mxu1 %v1353_v37  ;;  %3014 = vmatprep.subr.mxu1 %v1594_v29 }
 0x5fc   :  { %1848 = vmatprep.mubr.f32.mxu1 %v1378_v36  ;;  %3015 = vmatpush3.msra.mxu1 %v1594_v29  ;;  %v1449_v26 = vsel %vm135_vm3, %v3364_v24, %v3365_v22 }
 0x5fd   :  { %3016 = vmatprep.subr.mxu1 %v1593_v6  ;;  %1934 = vmatmul.mubr.f32.gmra.mxu0 %v4094_v21  ;;  %v1588_v21 = vld [vmem:[#allocation5 + $0x428] sm:$0xff] }
 0x5fe   :  { %3017 = vmatpush3.msra.mxu1 %v1593_v6  ;;  %3052 = vmatprep.mubr.msk.f32.mxu0 %vm3464_vm4, %v4405_v18 }
 0x5ff   :  { %1849 = vmatmul.mubr.f32.gmra.mxu1 %v1354_v23  ;;  %3018 = vmatprep.subr.mxu1 %v1592_v49 }
 0x600   :  { %3019 = vmatpush3.msra.mxu1 %v1592_v49  ;;  %3038 = vmatprep.mubr.f32.mxu1 %v1447_v53 }
 0x601   :  { %3020 = vmatprep.subr.mxu1 %v1591_v28 }
 0x602   :  { %3021 = vmatpush3.msra.mxu1 %v1591_v28 }
 0x603   :  { %3022 = vmatprep.subr.mxu1 %v1590_v47 }
 0x604   :  { %3023 = vmatpush3.msra.mxu1 %v1590_v47 }
 0x605   :  { %3024 = vmatprep.subr.mxu1 %v1589_v31 }
 0x606   :  { %3025 = vmatpush3.msra.mxu1 %v1589_v31 }
 0x607   :  { %3026 = vmatprep.subr.mxu1 %v1588_v21 }
 0x608   :  { %3027 = vmatpush3.msra.mxu1 %v1588_v21 }
 0x609   :  { %3028 = vmatprep.subr.mxu1 %v1587_v42 }
 0x60a   :  { %3029 = vmatpush3.msra.mxu1 %v1587_v42 }
 0x60b   :  { %3030 = vmatprep.subr.mxu1 %v1586_v38 }
 0x60c   :  { %3031 = vmatpush3.msra.mxu1 %v1586_v38 }
 0x60d   :  { %3032 = vmatprep.subr.mxu1 %v1585_v5 }
 0x60e   :  { %3033 = vmatpush3.msra.mxu1 %v1585_v5 }
 0x60f   :  { %3034 = vmatprep.subr.mxu1 %v1584_v8 }
 0x610   :  { %3035 = vmatpush3.msra.mxu1 %v1584_v8 }
 0x611   :  { %3036 = vmatprep.subr.mxu1 %v1583_v17 }
 0x612   :  { %3037 = vmatpush3.msra.mxu1 %v1583_v17 }
 0x613   :  { %3039 = vmatmul.mubr.f32.vlgmr.msra.gmra.mxu1 %v1448_v16  ;;  %3055 = vmatprep.subr.mxu1 %v4405_v18 }
 0x614   :  { %3041 = vmatprep.mubr.f32.mxu1 %v1449_v26  ;;  %3056 = vmatpush3.msra.mxu1 %v4195_v39 }
 0x615   :  { %3057 = vmatprep.subr.mxu1 %v4405_v18 }
 0x616   :  { %3058 = vmatpush3.msra.mxu1 %v4203_v40 }
 0x617   :  { %3042 = vmatmul.mubr.f32.gmra.mxu1 %v1450_v0  ;;  %3059 = vmatprep.subr.mxu1 %v4405_v18 }
 0x618   :  { %3060 = vmatpush3.msra.mxu1 %v4210_v41  ;;  %3087 = vmatprep.mubr.msk.f32.mxu1 %vm3464_vm4, %v4405_v18 }
 0x619   :  { %3061 = vmatprep.subr.mxu1 %v4405_v18 }
 0x61a   :  { %3062 = vmatpush3.msra.mxu1 %v4219_v32 }
 0x61b   :  { %3063 = vmatprep.subr.mxu1 %v4405_v18 }
 0x61c   :  { %3064 = vmatpush3.msra.mxu1 %v4226_v9 }
 0x61d   :  { %3065 = vmatprep.subr.mxu1 %v4405_v18 }
 0x61e   :  { %3066 = vmatpush3.msra.mxu1 %v4233_v46 }
 0x61f   :  { %3067 = vmatprep.subr.mxu1 %v4405_v18 }
 0x620   :  { %3068 = vmatpush3.msra.mxu1 %v4240_v50 }
 0x621   :  { %3069 = vmatprep.subr.mxu1 %v4405_v18 }
 0x622   :  { %3070 = vmatpush3.msra.mxu1 %v4247_v19 }
 0x623   :  { %3071 = vmatprep.subr.mxu1 %v4405_v18 }
 0x624   :  { %3072 = vmatpush3.msra.mxu1 %v4254_v35 }
 0x625   :  { %3073 = vmatprep.subr.mxu1 %v4405_v18 }
 0x626   :  { %3074 = vmatpush3.msra.mxu1 %v4261_v48 }
 0x627   :  { %3075 = vmatprep.subr.mxu1 %v4405_v18 }
 0x628   :  { %3076 = vmatpush3.msra.mxu1 %v4268_v51 }
 0x629   :  { %3077 = vmatprep.subr.mxu1 %v4405_v18 }
 0x62a   :  { %3078 = vmatpush3.msra.mxu1 %v4275_v54 }
 0x62b   :  { %3079 = vmatprep.subr.mxu1 %v4405_v18 }
 0x62c   :  { %3080 = vmatpush3.msra.mxu1 %v4282_v55 }
 0x62d   :  { %3081 = vmatprep.subr.mxu1 %v4405_v18 }
 0x62e   :  { %3082 = vmatpush3.msra.mxu1 %v4289_v44 }
 0x62f   :  { %3083 = vmatprep.subr.mxu1 %v4405_v18 }
 0x630   :  { %3084 = vmatpush3.msra.mxu1 %v4296_v25 }
 0x631   :  { %3085 = vmatprep.subr.mxu1 %v4405_v18 }
 0x632   :  { %3086 = vmatpush3.msra.mxu1 %v4303_v12 }
 0x68a   :  { %v2712_v56 = vpop.f32.mrf.mxu0 }
 0x68b   :  { %v2668_v58 = vpop.f32.mrf.mxu1 }
 0x68c   :  { %v2713_v59 = vpop.f32.mrf.mxu0 }
 0x68d   :  { %v2669_v30 = vpop.f32.mrf.mxu1  ;;  %v2714_v24 = vadd.f32 %v2713_v59, %v2712_v56 }
 0x68e   :  { %v2670_v2 = vadd.f32 %v2669_v30, %v2668_v58 }
 0x691   :  { %v2671_v57 = vpop.f32.mrf.mxu1 }
 0x693   :  { %v2672_v62 = vpop.f32.mrf.mxu1 }
 0x694   :  { %v2673_v16 = vadd.f32 %v2672_v62, %v2671_v57 }
 0x696   :  { %v2674_v1 = vpop.f32.mrf.mxu1 }
 0x698   :  { %v2675_v4 = vpop.f32.mrf.mxu1 }
 0x699   :  { %v2676_v14 = vadd.f32 %v2675_v4, %v2674_v1 }
 0x69a   :  { %v2715_v60 = vpop.f32.mrf.mxu0 }
 0x69b   :  { %v2677_v29 = vpop.f32.mrf.mxu1 }
 0x69c   :  { %v2716_v63 = vpop.f32.mrf.mxu0 }
 0x69d   :  { %v2678_v61 = vpop.f32.mrf.mxu1  ;;  %v2717_v17 = vadd.f32 %v2716_v63, %v2715_v60 }
 0x69e   :  { %v2679_v43 = vadd.f32 %v2678_v61, %v2677_v29  ;;  %v1751_v29 = vadd.f32 %v2714_v24, %v2670_v2  ;;  %v4419_v2 = vld [vmem:[#allocation11_spill] sm:$0xff] }
 0x69f   :  { %v1756_v25 = vadd.f32 %v2717_v17, %v2673_v16  ;;  %v4420_v16 = vld [vmem:[#allocation12_spill] sm:$0xff] }
 0x6a1   :  { %v2718_v3 = vpop.f32.mrf.mxu0 }
 0x6a3   :  { %v2719_v33 = vpop.f32.mrf.mxu0 }
 0x6a4   :  { %v2720_v8 = vadd.f32 %v2719_v33, %v2718_v3 }
 0x6a6   :  { %v2721_v7 = vpop.f32.mrf.mxu0  ;;  %v1761_v26 = vadd.f32 %v2720_v8, %v2676_v14 }
 0x6a8   :  { %v2722_v37 = vpop.f32.mrf.mxu0 }
 0x6a9   :  { %v2723_v27 = vadd.f32 %v2722_v37, %v2721_v7 }
 0x6ab   :  { %v1766_v20 = vadd.f32 %v2723_v27, %v2679_v43  ;;  %v2395_v43 = vld [vmem:[%s4382_s6] ss:$0 sm:$0xff] }
 0x6b1   :  { %v2800_v13 = vpop.f32.mrf.mxu0 }
 0x6b2   :  { %v2756_v34 = vpop.f32.mrf.mxu1 }
 0x6b3   :  { %v2801_v36 = vpop.f32.mrf.mxu0 }
 0x6b4   :  { %v2757_v6 = vpop.f32.mrf.mxu1  ;;  %v2802_v57 = vadd.f32 %v2801_v36, %v2800_v13 }
 0x6b5   :  { %v2803_v23 = vpop.f32.mrf.mxu0  ;;  %v2758_v44 = vadd.f32 %v2757_v6, %v2756_v34 }
 0x6b7   :  { %v2759_v11 = vpop.f32.mrf.mxu1  ;;  %v2804_v53 = vpop.f32.mrf.mxu0  ;;  %v1836_v63 = vadd.f32 %v2758_v44, %v1751_v29 }
 0x6b8   :  { %v2805_v4 = vadd.f32 %v2804_v53, %v2803_v23 }
 0x6b9   :  { %v2760_v49 = vpop.f32.mrf.mxu1  ;;  %v2806_v31 = vpop.f32.mrf.mxu0  ;;  %v1921_v34 = vadd.f32 %v2802_v57, %v1836_v63 }
 0x6ba   :  { %v2761_v0 = vadd.f32 %v2760_v49, %v2759_v11 }
 0x6bb   :  { %v2762_v28 = vpop.f32.mrf.mxu1  ;;  %v2807_v42 = vpop.f32.mrf.mxu0 }
 0x6bc   :  { %v1841_v3 = vadd.f32 %v2761_v0, %v1756_v25  ;;  %v2808_v33 = vadd.f32 %v2807_v42, %v2806_v31  ;;  %v2394_v42 = vld [vmem:[%s4381_s5] ss:$0 sm:$0xff]  ;;  %v4421_v0 = vld [vmem:[#allocation13_spill] sm:$0xff]  ;;  %s3431_s5 = scalar_lea.vmem %s2368_s20, 512 }
 0x6bd   :  { %v2763_v47 = vpop.f32.mrf.mxu1  ;;  %v2809_v5 = vpop.f32.mrf.mxu0  ;;  %p3432_p10 = scmp.ne.s32.totalorder %s2368_s20, %s3431_s5  ;;  %p3437_p12 = scmp.lt.s32.totalorder %s3431_s5, %s3431_s5 }
 0x6be   :  { %v2764_v22 = vadd.f32 %v2763_v47, %v2762_v28  ;;  %v1926_v59 = vadd.f32 %v2805_v4, %v1841_v3 }
 0x6bf   :  { %v2765_v21 = vpop.f32.mrf.mxu1  ;;  %v2810_v52 = vpop.f32.mrf.mxu0  ;;  %p3438_p13 = por %p3437_p12, %p3436_p11 }
 0x6c0   :  { %v1846_v55 = vadd.f32 %v2764_v22, %v1761_v26  ;;  %v2811_v7 = vadd.f32 %v2810_v52, %v2809_v5 }
 0x6c1   :  { %v2766_v38 = vpop.f32.mrf.mxu1  ;;  %p3439_p0 = pnand %p3438_p13, %p3432_p10 }
 0x6c2   :  { %v2767_v10 = vadd.f32 %v2766_v38, %v2765_v21  ;;  %v1931_v58 = vadd.f32 %v2808_v33, %v1846_v55 }
 0x6c4   :  { %v1851_v45 = vadd.f32 %v2767_v10, %v1766_v20 }
 0x6c6   :  { %v1936_v1 = vadd.f32 %v2811_v7, %v1851_v45  ;;  %v4414_v45 = vmov 1.0  }
 0x6d3   :  { %v3040_v12 = vpop.f32.mrf.mxu1 }
 0x6d4   :  { %v2011_v61 = vadd.f32 %v3040_v12, %v1926_v59 }
 0x6d5   :  { %v2005_v37 = vpop.f32.mrf.mxu1 }
 0x6d6   :  { %v2006_v25 = vadd.f32 %v2005_v37, %v1921_v34  ;;  %v4422_v37 = vld [vmem:[#allocation14_spill] sm:$0xff] }
 0x6d7   :  { %v3043_v60 = vpop.f32.mrf.mxu1 }
 0x6d8   :  { %v2021_v56 = vadd.f32 %v3043_v60, %v1936_v1 }
 0x6d9   :  { %v2015_v30 = vpop.f32.mrf.mxu1 }
 0x6da   :  { %v2016_v62 = vadd.f32 %v2015_v30, %v1931_v58  ;;  %3045 = vmatpush3.msra.mxu0 %v2021_v56 }
 0x6db   :  { %3046 = vmatprep.subr.mxu0 %v4405_v18 }
 0x6dc   :  { %3047 = vmatpush3.msra.mxu0 %v2016_v62 }
 0x6dd   :  { %3048 = vmatprep.subr.mxu0 %v4405_v18 }
 0x6de   :  { %3049 = vmatpush3.msra.mxu0 %v2011_v61 }
 0x6df   :  { %3050 = vmatprep.subr.mxu0 %v4405_v18 }
 0x6e0   :  { %3051 = vmatpush3.msra.mxu0 %v2006_v25 }
 0x6e1   :  { %3053 = vmatmul.mubr.msk.f32.vlgmr.msra.gmra.mxu0 %vm863_vm5, %v4414_v45  ;;  %3090 = vmatprep.subr.mxu0 %v4405_v18 }
 0x6e2   :  { %3098 = vmatprep.mubr.msk.f32.mxu0 %vm3464_vm4, %v4405_v18 }
 0x7a1   :  { %v2090_v55 = vpop.f32.mrf.mxu0 }
 0x7a2   :  { %3088 = vmatmul.mubr.f32.vlgmr.msra.gmra.mxu1 %v2090_v55 }
 0x7a3   :  { %v3054_v44 = vpop.f32.mrf.mxu0 }
 0x862   :  { %v2160_v12 = vpop.f32.mrf.mxu1 }
 0x863   :  { %v2164_v6 = vmul.f32 0.001953125, %v2160_v12 }
 0x864   :  { %v3089_v13 = vpop.f32.mrf.mxu1 }
 0x865   :  { %v2168_v11 = vrot.slane %v2164_v6, %v3975_v15 }
 0x867   :  { %v4315_v36 = vsub.f32 %v2021_v56, %v2168_v11  ;;  %v2171_v49 = vsub.f32 %v2016_v62, %v2168_v11  ;;  %v2170_v28 = vsub.f32 %v2011_v61, %v2168_v11  ;;  %v2169_v47 = vsub.f32 %v2006_v25, %v2168_v11 }
 0x869   :  { %v2176_v23 = vmul.f32 %v4315_v36, %v4315_v36  ;;  %v2175_v53 = vmul.f32 %v2171_v49, %v2171_v49  ;;  %v2174_v31 = vmul.f32 %v2170_v28, %v2170_v28  ;;  %v2173_v21 = vmul.f32 %v2169_v47, %v2169_v47 }
 0x86b   :  { %3091 = vmatpush3.msra.mxu0 %v2176_v23 }
 0x86c   :  { %3092 = vmatprep.subr.mxu0 %v4405_v18 }
 0x86d   :  { %3093 = vmatpush3.msra.mxu0 %v2175_v53 }
 0x86e   :  { %3094 = vmatprep.subr.mxu0 %v4405_v18 }
 0x86f   :  { %3095 = vmatpush3.msra.mxu0 %v2174_v31 }
 0x870   :  { %3096 = vmatprep.subr.mxu0 %v4405_v18 }
 0x871   :  { %3097 = vmatpush3.msra.mxu0 %v2173_v21 }
 0x872   :  { %3099 = vmatmul.mubr.msk.f32.vlgmr.msra.gmra.mxu0 %vm863_vm5, %v4414_v45  ;;  %3101 = vmatprep.subr.mxu0 %v4405_v18 }
 0x873   :  { %3102 = vmatpush3.msra.mxu0 %v4195_v39  ;;  %3133 = vmatprep.mubr.msk.f32.mxu0 %vm3464_vm4, %v4405_v18  ;;  %v4415_v39 = vld [vmem:[#allocation15_spill] sm:$0xff] }
 0x874   :  { %3103 = vmatprep.subr.mxu0 %v4405_v18 }
 0x875   :  { %3104 = vmatpush3.msra.mxu0 %v4203_v40  ;;  %v4416_v40 = vld [vmem:[#allocation16_spill] sm:$0xff] }
 0x876   :  { %3105 = vmatprep.subr.mxu0 %v4405_v18 }
 0x877   :  { %3106 = vmatpush3.msra.mxu0 %v4210_v41  ;;  %v4417_v41 = vld [vmem:[#allocation17_spill] sm:$0xff] }
 0x878   :  { %3107 = vmatprep.subr.mxu0 %v4405_v18 }
 0x879   :  { %3108 = vmatpush3.msra.mxu0 %v4219_v32  ;;  %v4418_v32 = vld [vmem:[#allocation18_spill] sm:$0xff] }
 0x87a   :  { %3109 = vmatprep.subr.mxu0 %v4405_v18 }
 0x87b   :  { %3110 = vmatpush3.msra.mxu0 %v4226_v9 }
 0x87c   :  { %3111 = vmatprep.subr.mxu0 %v4405_v18 }
 0x87d   :  { %3112 = vmatpush3.msra.mxu0 %v4233_v46 }
 0x87e   :  { %3113 = vmatprep.subr.mxu0 %v4405_v18 }
 0x87f   :  { %3114 = vmatpush3.msra.mxu0 %v4240_v50 }
 0x880   :  { %3115 = vmatprep.subr.mxu0 %v4405_v18 }
 0x881   :  { %3116 = vmatpush3.msra.mxu0 %v4247_v19 }
 0x882   :  { %3117 = vmatprep.subr.mxu0 %v4405_v18 }
 0x883   :  { %3118 = vmatpush3.msra.mxu0 %v4254_v35 }
 0x884   :  { %3119 = vmatprep.subr.mxu0 %v4405_v18 }
 0x885   :  { %3120 = vmatpush3.msra.mxu0 %v4261_v48 }
 0x886   :  { %3121 = vmatprep.subr.mxu0 %v4405_v18 }
 0x887   :  { %3122 = vmatpush3.msra.mxu0 %v4268_v51 }
 0x888   :  { %3123 = vmatprep.subr.mxu0 %v4405_v18 }
 0x889   :  { %3124 = vmatpush3.msra.mxu0 %v4275_v54 }
 0x88a   :  { %3125 = vmatprep.subr.mxu0 %v4405_v18 }
 0x88b   :  { %3126 = vmatpush3.msra.mxu0 %v4415_v39 }
 0x88c   :  { %3127 = vmatprep.subr.mxu0 %v4405_v18 }
 0x88d   :  { %3128 = vmatpush3.msra.mxu0 %v4416_v40 }
 0x88e   :  { %3129 = vmatprep.subr.mxu0 %v4405_v18 }
 0x88f   :  { %3130 = vmatpush3.msra.mxu0 %v4417_v41 }
 0x890   :  { %3131 = vmatprep.subr.mxu0 %v4405_v18 }
 0x891   :  { %3132 = vmatpush3.msra.mxu0 %v4418_v32 }
 0x932   :  { %v2243_v9 = vpop.f32.mrf.mxu0 }
 0x933   :  { %3134 = vmatmul.mubr.f32.vlgmr.msra.gmra.mxu0 %v2243_v9 }
 0x934   :  { %v3100_v46 = vpop.f32.mrf.mxu0 }
 0x9f3   :  { %v2313_v50 = vpop.f32.mrf.mxu0 }
 0x9f4   :  { %v2317_v19 = vmul.f32 0.001953125, %v2313_v50 }
 0x9f5   :  { %v3135_v35 = vpop.f32.mrf.mxu0 }
 0x9f6   :  { %v2318_v48 = vadd.f32 1e-05, %v2317_v19 }
 0x9f8   :  { %3373 = vrsqrt.f32 %v2318_v48 }
 0xa05   :  { %v3374_v51 = vpop.eup %3373 }
 0xa06   :  { %v2323_v54 = vrot.slane %v3374_v51, %v3975_v15 }
 0xa08   :  { %v2324_v38 = vmul.f32 %v2323_v54, %v2169_v47  ;;  %v2325_v27 = vmul.f32 %v2323_v54, %v2170_v28  ;;  %v2326_v18 = vmul.f32 %v2323_v54, %v2171_v49  ;;  %v2327_v5 = vmul.f32 %v2323_v54, %v4315_v36 }
 0xa0a   :  { %v2335_v8 = vmul.f32 %v2394_v42, %v2324_v38  ;;  %v2336_v10 = vmul.f32 %v2394_v42, %v2325_v27  ;;  %v2337_v14 = vmul.f32 %v2394_v42, %v2326_v18  ;;  %v2338_v17 = vmul.f32 %v2394_v42, %v2327_v5 }
 0xa0c   :  { %v2346_v20 = vadd.f32 %v2395_v43, %v2335_v8  ;;  %v2347_v22 = vadd.f32 %v2395_v43, %v2336_v10  ;;  %v2348_v15 = vadd.f32 %v2395_v43, %v2337_v14  ;;  %v2349_v24 = vadd.f32 %v2395_v43, %v2338_v17 }
 0xa0e   :  { %v2350_v52 = vadd.f32 %v2346_v20, %v4419_v2  ;;  %v2351_v26 = vadd.f32 %v2347_v22, %v4420_v16  ;;  %v2352_v7 = vadd.f32 %v2348_v15, %v4421_v0  ;;  %v2353_v29 = vadd.f32 %v2349_v24, %v4422_v37 }
 0xa10   :  { %v2354_v3 = vmax.f32 %v2350_v52, 0.0  ;;  %v2355_v33 = vmax.f32 %v2351_v26, 0.0  ;;  %v2356_v1 = vmax.f32 %v2352_v7, 0.0  ;;  %v2357_v60 = vmax.f32 %v2353_v29, 0.0 }
 0xa12   :  { %2358 = vst [vmem:[#allocation7] sm:$0xff] %v2354_v3  ;;  %2359 = vst [vmem:[#allocation7 + $0x8] sm:$0xff] %v2355_v33 }
 0xa13   :  { %2360 = vst [vmem:[#allocation7 + $0x10] sm:$0xff] %v2356_v1  ;;  %2361 = vst [vmem:[#allocation7 + $0x18] sm:$0xff] %v2357_v60 }
 0xa14   :  { %3442 = shalt.err (!%p3439_p0)
}
 0xa15   :  { %2373 = dma.vmem_to_hbm [thread:$0]  %s2368_s20, 512, %s4384_s8, [#allocation4], %s3458_s30, %s3458_s30, %s3459_s9  }
 0xa16   :  { %3455 = dma.done.wait [#allocation4], 512  }
 0xa17   :  { %3456 = vsyncadd [#allocation4], 4294966784 }
 0xa18   :  { %2377 = vsyncpa [#allocation3], 1 }
 0xa19   :  { %2378 = vsyncpa [#allocation6], 1 }
 0xa1a   :  { %2379 = vsyncpa [#allocation4], 1 }

</bundles_post_ra>
